<compile_context>
chip_gen: v7x
topology: tpu7x:2x2x1
jax: 0.10.0
libtpu: 0.0.40
codegen_flags: <defaults>
</compile_context>

<pallas_src>
import functools

import jax
import jax.numpy as jnp
from jax.experimental import pallas as pl
from jax.experimental.pallas import tpu as pltpu


def _detect_bf16_eup():
    """bf16 exp only pays off on chips with a bf16 EUP (v6e / v7x)."""
    try:
        kind = jax.devices()[0].device_kind.lower()
    except Exception:
        return False
    return ("v6" in kind) or ("v7" in kind)


_BF16_EXP = _detect_bf16_eup()


def _choose_tile(P, cap):
    """Largest lane tile (multiple of 128) dividing P, capped; else full P."""
    if P <= cap:
        return P
    t = (cap // 128) * 128
    while t >= 128:
        if P % t == 0:
            return t
        t -= 128
    return P


# ----------------------------------------------------------------------------
# Pallas kernel 1: pairwise Jaccard overlap + fused max/argmax reductions.
# Prior axis tiled on the second grid dim ("arbitrary"); per-object running
# max/argmax carried in VMEM scratch and finalized into the resident output.
# ----------------------------------------------------------------------------
def _jaccard_match_kernel(boxes_ref, priors_t_ref, maxov_ref, argobj_ref,
                          argprior_ref, mx_sc):
    j = pl.program_id(1)

    b = boxes_ref[0]                              # (n_obj, 4) xmin,ymin,xmax,ymax
    bx1, by1, bx2, by2 = b[:, 0:1], b[:, 1:2], b[:, 2:3], b[:, 3:4]
    px1 = priors_t_ref[0:1, :]                    # (1, tp)
    py1 = priors_t_ref[1:2, :]
    px2 = priors_t_ref[2:3, :]
    py2 = priors_t_ref[3:4, :]

    iw = jnp.maximum(jnp.minimum(bx2, px2) - jnp.maximum(bx1, px1), 0.0)
    ih = jnp.maximum(jnp.minimum(by2, py2) - jnp.maximum(by1, py1), 0.0)
    inter = iw * ih                               # (n_obj, tp)
    area_b = (bx2 - bx1) * (by2 - by1)            # (n_obj, 1)
    area_p = (px2 - px1) * (py2 - py1)            # (1, tp)
    union = jnp.maximum(area_b + area_p - inter, 1e-10)
    # divide -> reciprocal-multiply; exact (approx=False) so matches at the 0.5
    # threshold stay bit-identical to the reference.
    ov = inter * pl.reciprocal(union)             # (n_obj, tp)

    n_obj, tp = ov.shape

    # per-prior best object (each prior chunk is independent)
    mx0 = jnp.max(ov, axis=0, keepdims=True)                       # (1, tp)
    row_ids = jax.lax.broadcasted_iota(jnp.int32, ov.shape, 0)
    arg0 = jnp.min(jnp.where(ov == mx0, row_ids, n_obj), axis=0,
                   keepdims=True)                                  # (1, tp)
    maxov_ref[0] = mx0
    argobj_ref[0] = arg0

    # per-object best prior: running max/argmax across prior chunks
    @pl.when(j == 0)
    def _():
        mx_sc[...] = jnp.full((n_obj, 1), -1.0, jnp.float32)
        argprior_ref[0] = jnp.zeros((n_obj, 1), jnp.int32)

    mx1 = jnp.max(ov, axis=1, keepdims=True)                       # (n_obj, 1)
    col_ids = jax.lax.broadcasted_iota(jnp.int32, ov.shape, 1)
    arg1 = jnp.min(jnp.where(ov == mx1, col_ids, tp), axis=1,
                   keepdims=True) + j * tp                         # (n_obj, 1)
    better = mx1 > mx_sc[...]                     # strict '>' keeps first hit
    argprior_ref[0] = jnp.where(better, arg1, argprior_ref[0])
    mx_sc[...] = jnp.maximum(mx1, mx_sc[...])


def jaccard_match(boxes_xy, priors_xy_t):
    """boxes_xy (B, n_obj, 4), priors_xy_t (4, P) ->
       max_overlap (B, P) f32, obj_for_prior (B, P) i32, prior_for_obj (B, n_obj) i32."""
    B, n_obj, _ = boxes_xy.shape
    P = priors_xy_t.shape[1]
    tp = _choose_tile(P, cap=2048)
    nchunks = P // tp
    maxov, argobj, argprior = pl.pallas_call(
        _jaccard_match_kernel,
        out_shape=(jax.ShapeDtypeStruct((B, 1, P), jnp.float32),
                   jax.ShapeDtypeStruct((B, 1, P), jnp.int32),
                   jax.ShapeDtypeStruct((B, n_obj, 1), jnp.int32)),
        grid=(B, nchunks),
        in_specs=[
            pl.BlockSpec((1, n_obj, 4), lambda i, j: (i, 0, 0)),
            pl.BlockSpec((4, tp), lambda i, j: (0, j)),            # priors shared
        ],
        out_specs=(pl.BlockSpec((1, 1, tp), lambda i, j: (i, 0, j)),
                   pl.BlockSpec((1, 1, tp), lambda i, j: (i, 0, j)),
                   pl.BlockSpec((1, n_obj, 1), lambda i, j: (i, 0, 0))),
        scratch_shapes=[pltpu.VMEM((n_obj, 1), jnp.float32)],
        compiler_params=pltpu.CompilerParams(
            dimension_semantics=("parallel", "arbitrary")),
    )(boxes_xy, priors_xy_t)
    return maxov[:, 0, :], argobj[:, 0, :], argprior[:, :, 0]


# ----------------------------------------------------------------------------
# Pallas kernel 2: per-prior cross-entropy + in-kernel matched-box gather +
# box encoding + masked L1.  Lane-dense: prior axis on the 128-wide lane dim.
# Outputs: (a) negative-CE pool (positives zeroed), (b) per-tile scalar sum of
# the positive term  pos_ce + alpha * L1 / 4.
# ----------------------------------------------------------------------------
def _loss_kernel(sc_ref, lp_ref, pc_ref, obj_ref, cls_ref, boxes_ref,
                 negce_ref, possum_ref, *, alpha, bf16_exp):
    s = sc_ref[0].astype(jnp.float32)             # (C, tn)  classes on sublanes
    cls = cls_ref[0]                              # (1, tn)  int32
    obj = obj_ref[0]                              # (1, tn)  int32
    bx = boxes_ref[0]                             # (4, n_obj) gt boxes (resident)
    pc = pc_ref[...]                              # (4, tn)  priors cx,cy,w,h
    lp = lp_ref[0].astype(jnp.float32)            # (4, tn)  predicted offsets

    # ---- cross entropy (reduction='none'): logsumexp(s) - s[true] ----------
    m = jnp.max(s, axis=0, keepdims=True)
    z = s - m
    if bf16_exp:     # bf16 EUP (v6e/v7x): ~2x exp throughput; f32 accumulation
        e = jnp.exp(z.astype(jnp.bfloat16)).astype(jnp.float32)
    else:
        e = jnp.exp(z)
    lse = m + jnp.log(jnp.sum(e, axis=0, keepdims=True))
    onehot_c = jax.lax.broadcasted_iota(jnp.int32, s.shape, 0) == cls
    picked = jnp.sum(jnp.where(onehot_c, s, 0.0), axis=0, keepdims=True)
    ce = lse - picked                                              # (1, tn)

    # ---- gather matched gt boxes in-kernel (one-hot select over n_obj) -----
    n_obj = bx.shape[1]
    mb = jnp.zeros((4, obj.shape[1]), jnp.float32)                 # (4, tn)
    for o in range(n_obj):                        # n_obj is tiny & static
        mb = mb + jnp.where(obj == o, bx[:, o:o + 1], 0.0)

    pos = cls != 0                                # (1, tn)
    posf = pos.astype(jnp.float32)

    # ---- encode: xy -> cxcy -> gcxgcy w.r.t. priors (cxcy) -----------------
    cx = (mb[0:1] + mb[2:3]) * 0.5
    cy = (mb[1:2] + mb[3:4]) * 0.5
    # mask before the log: negative priors would otherwise inject NaN*0 = NaN
    w = jnp.where(pos, mb[2:3] - mb[0:1], 1.0)
    h = jnp.where(pos, mb[3:4] - mb[1:2], 1.0)

    # prior w/h reciprocals computed once, reused for center and size encodes
    rcp_w = pl.reciprocal(pc[2:3])
    rcp_h = pl.reciprocal(pc[3:4])
    gcx = (cx - pc[0:1]) * (10.0 * rcp_w)
    gcy = (cy - pc[1:2]) * (10.0 * rcp_h)
    gw = jnp.log(w * rcp_w) * 5.0
    gh = jnp.log(h * rcp_h) * 5.0

    l1 = (jnp.abs(lp[0:1] - gcx) + jnp.abs(lp[1:2] - gcy)
          + jnp.abs(lp[2:3] - gw) + jnp.abs(lp[3:4] - gh))         # (1, tn)

    # negatives pool (positives zeroed in-kernel -> ready for hard-neg mining)
    negce_ref[0] = jnp.where(pos, 0.0, ce)
    # positive term partial sum for this tile: pos_ce + alpha * L1 / 4
    pos_tile_sum = jnp.sum(posf * (ce + (0.25 * alpha) * l1))
    lane = jax.lax.broadcasted_iota(jnp.int32, (1, 128), 1)
    possum_ref[0] = jnp.where(lane == 0, pos_tile_sum, 0.0)


def loss_terms(scores_cf, locs_cf, boxes_t, priors_cxcy_t, obj, cls, *, alpha):
    """scores_cf (B,C,P), locs_cf (B,4,P), boxes_t (B,4,n_obj),
       priors_cxcy_t (4,P), obj/cls (B,1,P) i32 ->
       neg_ce (B,P) f32 (positives zeroed), pos_term_sum () f32."""
    B, C, P = scores_cf.shape
    n_obj = boxes_t.shape[2]
    tn = _choose_tile(P, cap=16384)
    nj = P // tn
    kernel = functools.partial(_loss_kernel, alpha=float(alpha),
                               bf16_exp=_BF16_EXP)
    neg_ce, pos_sums = pl.pallas_call(
        kernel,
        out_shape=(jax.ShapeDtypeStruct((B, 1, P), jnp.float32),
                   jax.ShapeDtypeStruct((B, 1, nj * 128), jnp.float32)),
        grid=(B, nj),
        in_specs=[
            pl.BlockSpec((1, C, tn), lambda b, j: (b, 0, j)),
            pl.BlockSpec((1, 4, tn), lambda b, j: (b, 0, j)),
            pl.BlockSpec((4, tn), lambda b, j: (0, j)),            # shared priors
            pl.BlockSpec((1, 1, tn), lambda b, j: (b, 0, j)),
            pl.BlockSpec((1, 1, tn), lambda b, j: (b, 0, j)),
            pl.BlockSpec((1, 4, n_obj), lambda b, j: (b, 0, 0)),   # tiny resident boxes
        ],
        out_specs=(pl.BlockSpec((1, 1, tn), lambda b, j: (b, 0, j)),
                   pl.BlockSpec((1, 1, 128), lambda b, j: (b, 0, j))),
        # TODO(synk): on v7x mark an axis pltpu.CORE_PARALLEL (or use
        # pl.core_map over a 2-core mesh) so both TensorCores are engaged;
        # kept the portable "parallel" semantics here.
        compiler_params=pltpu.CompilerParams(
            dimension_semantics=("parallel", "parallel")),
    )(scores_cf, locs_cf, priors_cxcy_t, obj, cls, boxes_t)
    return neg_ce[:, 0, :], jnp.sum(pos_sums)


# ----------------------------------------------------------------------------
# JAX glue: force-match scatter, label assignment, hard-neg mining, reductions
# ----------------------------------------------------------------------------
def cxcy_to_xy(cxcy):
    return jnp.concatenate([cxcy[:, :2] - cxcy[:, 2:] / 2.0,
                            cxcy[:, :2] + cxcy[:, 2:] / 2.0], axis=1)


def _force_match(max_ov, obj_for_prior, prior_for_obj):
    """Each object's best prior gets overlap 1.0 and that object.  Sequential
    over objects so duplicate best-priors deterministically resolve to the
    *last* object (matching the reference assignment order)."""
    B, n_obj = prior_for_obj.shape
    batch_idx = jnp.arange(B, dtype=jnp.int32)

    def body(o, carry):
        mo, ofp = carry
        p = prior_for_obj[:, o]                   # (B,)
        mo = mo.at[batch_idx, p].set(1.0)
        ofp = ofp.at[batch_idx, p].set(o)
        return mo, ofp

    return jax.lax.fori_loop(0, n_obj, body, (max_ov, obj_for_prior))


@functools.partial(jax.jit, static_argnames=("threshold", "neg_pos_ratio", "alpha"))
def multibox_loss(predicted_locs_cf, predicted_scores_cf, boxes, labels,
                  priors_cxcy, threshold=0.5, neg_pos_ratio=3, alpha=1.0):
    """
    predicted_locs_cf:   (B, 4, P) float32 -- channel-major (prior axis last);
                         the detection head should emit this layout directly so
                         no standalone HBM transpose is needed.
    predicted_scores_cf: (B, C, P) float32 (bf16 also accepted; upcast in-kernel)
    boxes:               (B, n_obj, 4) float32 xy corners (fixed n_obj per image)
    labels:              (B, n_obj) int32, values in [1, C-1]
    priors_cxcy:         (P, 4) float32
    """
    B, C, P = predicted_scores_cf.shape
    priors_xy_t = cxcy_to_xy(priors_cxcy).T                       # (4, P)
    priors_cxcy_t = priors_cxcy.T                                 # (4, P)

    # (1) pairwise IoU with fused max/argmax reductions (Pallas)
    max_ov, obj_for_prior, prior_for_obj = jaccard_match(boxes, priors_xy_t)

    # (2) tiny force-match scatter + label assignment in plain JAX
    max_ov, obj_for_prior = _force_match(max_ov, obj_for_prior, prior_for_obj)
    label_for_prior = jnp.take_along_axis(labels, obj_for_prior, axis=1)
    true_classes = jnp.where(max_ov < threshold, 0,
                             label_for_prior).astype(jnp.int32)   # (B, P)

    # (3) per-prior CE + in-kernel matched-box gather + encode + masked L1
    neg_ce, pos_term_sum = loss_terms(
        predicted_scores_cf, predicted_locs_cf,
        boxes.transpose(0, 2, 1),                                 # (B,4,n_obj) tiny
        priors_cxcy_t,
        obj_for_prior[:, None, :].astype(jnp.int32),              # (B,1,P)
        true_classes[:, None, :],                                 # (B,1,P)
        alpha=alpha)

    # (4) hard negative mining + final reduction
    positive = true_classes != 0
    n_positives = jnp.sum(positive, axis=1)                       # (B,)
    denom = jnp.maximum(jnp.sum(n_positives).astype(jnp.float32), 1.0)

    # descending sort without the extra lane-reverse pass
    # TODO(synk): exact hard-negative mining needs a per-row variable-k top
    # selection; lax.top_k requires a static k, so the full sort is kept.
    neg_sorted = -jnp.sort(-neg_ce, axis=1)
    hard = (jnp.arange(P, dtype=jnp.int32)[None, :]
            < (neg_pos_ratio * n_positives)[:, None])
    hard_neg_sum = jnp.sum(jnp.where(hard, neg_sorted, 0.0))

    # total = conf_loss + alpha * loc_loss; the positive term was folded as
    # pos_ce + alpha * L1 / 4 per prior inside the kernel.
    return (hard_neg_sum + pos_term_sum) / denom


# ----------------------------------------------------------------------------
# main
# ----------------------------------------------------------------------------
if __name__ == "__main__":
    B, n_obj, C = 2, 8, 8
    fm = 16                                   # 16x16 prior grid -> P = 256
    P = fm * fm

    # deterministic priors (cx, cy, w, h)
    xs = (jnp.arange(fm, dtype=jnp.float32) + 0.5) / fm
    cy_g, cx_g = jnp.meshgrid(xs, xs, indexing="ij")
    priors_cxcy = jnp.stack(
        [cx_g.ravel(), cy_g.ravel(),
         jnp.full((P,), 0.1, jnp.float32), jnp.full((P,), 0.1, jnp.float32)],
        axis=-1)

    key = jax.random.PRNGKey(0)
    k1, k2, k3, k4, k5 = jax.random.split(key, 5)

    # ground-truth boxes in xy, guaranteed valid (xmax > xmin, ymax > ymin)
    centers = jax.random.uniform(k1, (B, n_obj, 2), minval=0.2, maxval=0.8)
    sizes = jax.random.uniform(k2, (B, n_obj, 2), minval=0.05, maxval=0.3)
    boxes = jnp.concatenate([centers - sizes / 2.0, centers + sizes / 2.0],
                            axis=-1).astype(jnp.float32)
    labels = jax.random.randint(k3, (B, n_obj), 1, C, dtype=jnp.int32)

    # channel-major predictions (the layout a conv detection head emits)
    predicted_locs_cf = jax.random.normal(k4, (B, 4, P), jnp.float32)
    predicted_scores_cf = jax.random.normal(k5, (B, C, P), jnp.float32)

    loss = multibox_loss(predicted_locs_cf, predicted_scores_cf, boxes, labels,
                         priors_cxcy, threshold=0.5, neg_pos_ratio=3, alpha=1.0)
    loss = jax.block_until_ready(loss)
    assert jnp.isfinite(loss), f"non-finite loss: {loss}"
    print("KERNEL_OK")
</pallas_src>

<mosaic_0001>
module attributes {stable_mosaic.version = 11 : i64} {
  func.func @_jaccard_match_kernel(%arg0: i32, %arg1: i32, %arg2: memref<1x8x4xf32, #tpu.memory_space<vmem>>, %arg3: memref<4x256xf32, #tpu.memory_space<vmem>>, %arg4: memref<1x1x256xf32, #tpu.memory_space<vmem>>, %arg5: memref<1x1x256xi32, #tpu.memory_space<vmem>>, %arg6: memref<1x8x1xi32, #tpu.memory_space<vmem>>, %arg7: memref<8x1xf32, #tpu.memory_space<vmem>>) attributes {dimension_semantics = [#tpu.dimension_semantics<parallel>, #tpu.dimension_semantics<arbitrary>], iteration_bounds = array<i64: 2, 1>, scalar_prefetch = 0 : i64, scratch_operands = 1 : i64, tpu.core_type = #tpu.core_type<tc>, window_params = [{transform_indices = @transform_0, window_bounds = array<i64: 1, 8, 4>}, {transform_indices = @transform_1, window_bounds = array<i64: 4, 256>}, {transform_indices = @transform_2, window_bounds = array<i64: 1, 1, 256>}, {transform_indices = @transform_3, window_bounds = array<i64: 1, 1, 256>}, {transform_indices = @transform_4, window_bounds = array<i64: 1, 8, 1>}]} {
    %c0 = arith.constant 0 : index
    %c0_0 = arith.constant 0 : index
    %c0_1 = arith.constant 0 : index
    %0 = vector.load %arg2[%c0, %c0_0, %c0_1] : memref<1x8x4xf32, #tpu.memory_space<vmem>>, vector<1x8x4xf32>
    %1 = vector.shape_cast %0 : vector<1x8x4xf32> to vector<8x4xf32>
    %2 = vector.extract_strided_slice %1 {offsets = [0, 0], sizes = [8, 1], strides = [1, 1]} : vector<8x4xf32> to vector<8x1xf32>
    %3 = vector.extract_strided_slice %1 {offsets = [0, 1], sizes = [8, 1], strides = [1, 1]} : vector<8x4xf32> to vector<8x1xf32>
    %4 = vector.extract_strided_slice %1 {offsets = [0, 2], sizes = [8, 1], strides = [1, 1]} : vector<8x4xf32> to vector<8x1xf32>
    %5 = vector.extract_strided_slice %1 {offsets = [0, 3], sizes = [8, 1], strides = [1, 1]} : vector<8x4xf32> to vector<8x1xf32>
    %c0_2 = arith.constant 0 : index
    %c0_3 = arith.constant 0 : index
    %6 = vector.load %arg3[%c0_2, %c0_3] : memref<4x256xf32, #tpu.memory_space<vmem>>, vector<1x256xf32>
    %c1 = arith.constant 1 : index
    %c0_4 = arith.constant 0 : index
    %7 = vector.load %arg3[%c1, %c0_4] : memref<4x256xf32, #tpu.memory_space<vmem>>, vector<1x256xf32>
    %c2 = arith.constant 2 : index
    %c0_5 = arith.constant 0 : index
    %8 = vector.load %arg3[%c2, %c0_5] : memref<4x256xf32, #tpu.memory_space<vmem>>, vector<1x256xf32>
    %c3 = arith.constant 3 : index
    %c0_6 = arith.constant 0 : index
    %9 = vector.load %arg3[%c3, %c0_6] : memref<4x256xf32, #tpu.memory_space<vmem>>, vector<1x256xf32>
    %10 = vector.broadcast %4 : vector<8x1xf32> to vector<8x256xf32>
    %11 = vector.broadcast %8 : vector<1x256xf32> to vector<8x256xf32>
    %12 = arith.minimumf %10, %11 : vector<8x256xf32>
    %13 = vector.broadcast %2 : vector<8x1xf32> to vector<8x256xf32>
    %14 = vector.broadcast %6 : vector<1x256xf32> to vector<8x256xf32>
    %15 = arith.maximumf %13, %14 : vector<8x256xf32>
    %16 = arith.subf %12, %15 : vector<8x256xf32>
    %cst = arith.constant 0.000000e+00 : f32
    %17 = vector.broadcast %cst : f32 to vector<8x256xf32>
    %18 = arith.maximumf %16, %17 : vector<8x256xf32>
    %19 = vector.broadcast %5 : vector<8x1xf32> to vector<8x256xf32>
    %20 = vector.broadcast %9 : vector<1x256xf32> to vector<8x256xf32>
    %21 = arith.minimumf %19, %20 : vector<8x256xf32>
    %22 = vector.broadcast %3 : vector<8x1xf32> to vector<8x256xf32>
    %23 = vector.broadcast %7 : vector<1x256xf32> to vector<8x256xf32>
    %24 = arith.maximumf %22, %23 : vector<8x256xf32>
    %25 = arith.subf %21, %24 : vector<8x256xf32>
    %cst_7 = arith.constant 0.000000e+00 : f32
    %26 = vector.broadcast %cst_7 : f32 to vector<8x256xf32>
    %27 = arith.maximumf %25, %26 : vector<8x256xf32>
    %28 = arith.mulf %18, %27 : vector<8x256xf32>
    %29 = arith.subf %4, %2 : vector<8x1xf32>
    %30 = arith.subf %5, %3 : vector<8x1xf32>
    %31 = arith.mulf %29, %30 : vector<8x1xf32>
    %32 = arith.subf %8, %6 : vector<1x256xf32>
    %33 = arith.subf %9, %7 : vector<1x256xf32>
    %34 = arith.mulf %32, %33 : vector<1x256xf32>
    %35 = vector.broadcast %31 : vector<8x1xf32> to vector<8x256xf32>
    %36 = vector.broadcast %34 : vector<1x256xf32> to vector<8x256xf32>
    %37 = arith.addf %35, %36 : vector<8x256xf32>
    %38 = arith.subf %37, %28 : vector<8x256xf32>
    %cst_8 = arith.constant 1.000000e-10 : f32
    %39 = vector.broadcast %cst_8 : f32 to vector<8x256xf32>
    %40 = arith.maximumf %38, %39 : vector<8x256xf32>
    %41 = tpu.reciprocal %40 : vector<8x256xf32> -> vector<8x256xf32>
    %42 = arith.mulf %28, %41 : vector<8x256xf32>
    %cst_9 = arith.constant dense<0xFF800000> : vector<256xf32>
    %43 = vector.multi_reduction <maximumf>, %42, %cst_9 [0] : vector<8x256xf32> to vector<256xf32>
    %44 = vector.shape_cast %43 : vector<256xf32> to vector<1x256xf32>
    %45 = tpu.iota {dimensions = array<i32: 0>} : vector<8x256xi32>
    %46 = vector.broadcast %44 : vector<1x256xf32> to vector<8x256xf32>
    %47 = arith.cmpf oeq, %42, %46 : vector<8x256xf32>
    %c8_i32 = arith.constant 8 : i32
    %48 = vector.broadcast %c8_i32 : i32 to vector<8x256xi32>
    %49 = arith.select %47, %45, %48 : vector<8x256xi1>, vector<8x256xi32>
    %cst_10 = arith.constant dense<2147483647> : vector<256xi32>
    %50 = vector.multi_reduction <minsi>, %49, %cst_10 [0] : vector<8x256xi32> to vector<256xi32>
    %51 = vector.shape_cast %50 : vector<256xi32> to vector<1x256xi32>
    %c0_11 = arith.constant 0 : index
    %c0_12 = arith.constant 0 : index
    %c0_13 = arith.constant 0 : index
    %52 = vector.load %arg4[%c0_11, %c0_12, %c0_13] : memref<1x1x256xf32, #tpu.memory_space<vmem>>, vector<1x1x256xf32>
    %53 = vector.shape_cast %52 : vector<1x1x256xf32> to vector<1x256xf32>
    %54 = vector.shape_cast %44 : vector<1x256xf32> to vector<1x1x256xf32>
    tpu.vector_store %arg4[%c0_11, %c0_12, %c0_13], %54 {strides = array<i32>} : memref<1x1x256xf32, #tpu.memory_space<vmem>>, vector<1x1x256xf32>,
    %c0_14 = arith.constant 0 : index
    %c0_15 = arith.constant 0 : index
    %c0_16 = arith.constant 0 : index
    %55 = vector.load %arg5[%c0_14, %c0_15, %c0_16] : memref<1x1x256xi32, #tpu.memory_space<vmem>>, vector<1x1x256xi32>
    %56 = vector.shape_cast %55 : vector<1x1x256xi32> to vector<1x256xi32>
    %57 = vector.shape_cast %51 : vector<1x256xi32> to vector<1x1x256xi32>
    tpu.vector_store %arg5[%c0_14, %c0_15, %c0_16], %57 {strides = array<i32>} : memref<1x1x256xi32, #tpu.memory_space<vmem>>, vector<1x1x256xi32>,
    %c0_i32 = arith.constant 0 : i32
    %58 = arith.cmpi eq, %arg1, %c0_i32 : i32
    %59 = arith.extui %58 : i1 to i32
    %c0_i32_17 = arith.constant 0 : i32
    %60 = arith.cmpi ne, %59, %c0_i32_17 : i32
    scf.if %60 {
      %cst_33 = arith.constant -1.000000e+00 : f32
      %84 = vector.broadcast %cst_33 : f32 to vector<8x1xf32>
      %c0_34 = arith.constant 0 : index
      %c0_35 = arith.constant 0 : index
      %85 = vector.load %arg7[%c0_34, %c0_35] : memref<8x1xf32, #tpu.memory_space<vmem>>, vector<8x1xf32>
      tpu.vector_store %arg7[%c0_34, %c0_35], %84 {strides = array<i32>} : memref<8x1xf32, #tpu.memory_space<vmem>>, vector<8x1xf32>,
      %c0_i32_36 = arith.constant 0 : i32
      %86 = vector.broadcast %c0_i32_36 : i32 to vector<8x1xi32>
      %c0_37 = arith.constant 0 : index
      %c0_38 = arith.constant 0 : index
      %c0_39 = arith.constant 0 : index
      %87 = vector.load %arg6[%c0_37, %c0_38, %c0_39] : memref<1x8x1xi32, #tpu.memory_space<vmem>>, vector<1x8x1xi32>
      %88 = vector.shape_cast %87 : vector<1x8x1xi32> to vector<8x1xi32>
      %89 = vector.shape_cast %86 : vector<8x1xi32> to vector<1x8x1xi32>
      tpu.vector_store %arg6[%c0_37, %c0_38, %c0_39], %89 {strides = array<i32>} : memref<1x8x1xi32, #tpu.memory_space<vmem>>, vector<1x8x1xi32>,
    } else {
    }
    %cst_18 = arith.constant dense<0xFF800000> : vector<8xf32>
    %61 = vector.multi_reduction <maximumf>, %42, %cst_18 [1] : vector<8x256xf32> to vector<8xf32>
    %62 = vector.shape_cast %61 : vector<8xf32> to vector<8x1xf32>
    %63 = tpu.iota {dimensions = array<i32: 1>} : vector<8x256xi32>
    %64 = vector.broadcast %62 : vector<8x1xf32> to vector<8x256xf32>
    %65 = arith.cmpf oeq, %42, %64 : vector<8x256xf32>
    %c256_i32 = arith.constant 256 : i32
    %66 = vector.broadcast %c256_i32 : i32 to vector<8x256xi32>
    %67 = arith.select %65, %63, %66 : vector<8x256xi1>, vector<8x256xi32>
    %cst_19 = arith.constant dense<2147483647> : vector<8xi32>
    %68 = vector.multi_reduction <minsi>, %67, %cst_19 [1] : vector<8x256xi32> to vector<8xi32>
    %69 = vector.shape_cast %68 : vector<8xi32> to vector<8x1xi32>
    %c256_i32_20 = arith.constant 256 : i32
    %70 = arith.muli %arg1, %c256_i32_20 : i32
    %71 = vector.broadcast %70 : i32 to vector<8x1xi32>
    %72 = arith.addi %69, %71 : vector<8x1xi32>
    %c0_21 = arith.constant 0 : index
    %c0_22 = arith.constant 0 : index
    %73 = vector.load %arg7[%c0_21, %c0_22] : memref<8x1xf32, #tpu.memory_space<vmem>>, vector<8x1xf32>
    %74 = arith.cmpf ogt, %62, %73 : vector<8x1xf32>
    %c0_23 = arith.constant 0 : index
    %c0_24 = arith.constant 0 : index
    %c0_25 = arith.constant 0 : index
    %75 = vector.load %arg6[%c0_23, %c0_24, %c0_25] : memref<1x8x1xi32, #tpu.memory_space<vmem>>, vector<1x8x1xi32>
    %76 = vector.shape_cast %75 : vector<1x8x1xi32> to vector<8x1xi32>
    %77 = arith.select %74, %72, %76 : vector<8x1xi1>, vector<8x1xi32>
    %c0_26 = arith.constant 0 : index
    %c0_27 = arith.constant 0 : index
    %c0_28 = arith.constant 0 : index
    %78 = vector.load %arg6[%c0_26, %c0_27, %c0_28] : memref<1x8x1xi32, #tpu.memory_space<vmem>>, vector<1x8x1xi32>
    %79 = vector.shape_cast %78 : vector<1x8x1xi32> to vector<8x1xi32>
    %80 = vector.shape_cast %77 : vector<8x1xi32> to vector<1x8x1xi32>
    tpu.vector_store %arg6[%c0_26, %c0_27, %c0_28], %80 {strides = array<i32>} : memref<1x8x1xi32, #tpu.memory_space<vmem>>, vector<1x8x1xi32>,
    %c0_29 = arith.constant 0 : index
    %c0_30 = arith.constant 0 : index
    %81 = vector.load %arg7[%c0_29, %c0_30] : memref<8x1xf32, #tpu.memory_space<vmem>>, vector<8x1xf32>
    %82 = arith.maximumf %62, %81 : vector<8x1xf32>
    %c0_31 = arith.constant 0 : index
    %c0_32 = arith.constant 0 : index
    %83 = vector.load %arg7[%c0_31, %c0_32] : memref<8x1xf32, #tpu.memory_space<vmem>>, vector<8x1xf32>
    tpu.vector_store %arg7[%c0_31, %c0_32], %82 {strides = array<i32>} : memref<8x1xf32, #tpu.memory_space<vmem>>, vector<8x1xf32>,
    return
  }
  func.func @transform_0(%arg0: i32, %arg1: i32) -> (i32, i32, i32) {
    %c0_i32 = arith.constant 0 : i32
    %c0_i32_0 = arith.constant 0 : i32
    %c0_i32_1 = arith.constant 0 : i32
    return %arg0, %c0_i32, %c0_i32_0 : i32, i32, i32
  }
  func.func @transform_1(%arg0: i32, %arg1: i32) -> (i32, i32) {
    %c0_i32 = arith.constant 0 : i32
    %c0_i32_0 = arith.constant 0 : i32
    return %c0_i32, %arg1 : i32, i32
  }
  func.func @transform_2(%arg0: i32, %arg1: i32) -> (i32, i32, i32) {
    %c0_i32 = arith.constant 0 : i32
    %c0_i32_0 = arith.constant 0 : i32
    return %arg0, %c0_i32, %arg1 : i32, i32, i32
  }
  func.func @transform_3(%arg0: i32, %arg1: i32) -> (i32, i32, i32) {
    %c0_i32 = arith.constant 0 : i32
    %c0_i32_0 = arith.constant 0 : i32
    return %arg0, %c0_i32, %arg1 : i32, i32, i32
  }
  func.func @transform_4(%arg0: i32, %arg1: i32) -> (i32, i32, i32) {
    %c0_i32 = arith.constant 0 : i32
    %c0_i32_0 = arith.constant 0 : i32
    %c0_i32_1 = arith.constant 0 : i32
    return %arg0, %c0_i32, %c0_i32_0 : i32, i32, i32
  }
}

module attributes {stable_mosaic.version = 11 : i64} {
  func.func @_loss_kernel(%arg0: i32, %arg1: i32, %arg2: memref<1x8x256xf32, #tpu.memory_space<vmem>>, %arg3: memref<1x4x256xf32, #tpu.memory_space<vmem>>, %arg4: memref<4x256xf32, #tpu.memory_space<vmem>>, %arg5: memref<1x1x256xi32, #tpu.memory_space<vmem>>, %arg6: memref<1x1x256xi32, #tpu.memory_space<vmem>>, %arg7: memref<1x4x8xf32, #tpu.memory_space<vmem>>, %arg8: memref<1x1x256xf32, #tpu.memory_space<vmem>>, %arg9: memref<1x1x128xf32, #tpu.memory_space<vmem>>) attributes {dimension_semantics = [#tpu.dimension_semantics<parallel>, #tpu.dimension_semantics<parallel>], iteration_bounds = array<i64: 2, 1>, scalar_prefetch = 0 : i64, scratch_operands = 0 : i64, tpu.core_type = #tpu.core_type<tc>, window_params = [{transform_indices = @transform_0, window_bounds = array<i64: 1, 8, 256>}, {transform_indices = @transform_1, window_bounds = array<i64: 1, 4, 256>}, {transform_indices = @transform_2, window_bounds = array<i64: 4, 256>}, {transform_indices = @transform_3, window_bounds = array<i64: 1, 1, 256>}, {transform_indices = @transform_4, window_bounds = array<i64: 1, 1, 256>}, {transform_indices = @transform_5, window_bounds = array<i64: 1, 4, 8>}, {transform_indices = @transform_6, window_bounds = array<i64: 1, 1, 256>}, {transform_indices = @transform_7, window_bounds = array<i64: 1, 1, 128>}]} {
    %c0 = arith.constant 0 : index
    %c0_0 = arith.constant 0 : index
    %c0_1 = arith.constant 0 : index
    %0 = vector.load %arg2[%c0, %c0_0, %c0_1] : memref<1x8x256xf32, #tpu.memory_space<vmem>>, vector<1x8x256xf32>
    %1 = vector.shape_cast %0 : vector<1x8x256xf32> to vector<8x256xf32>
    %c0_2 = arith.constant 0 : index
    %c0_3 = arith.constant 0 : index
    %c0_4 = arith.constant 0 : index
    %2 = vector.load %arg6[%c0_2, %c0_3, %c0_4] : memref<1x1x256xi32, #tpu.memory_space<vmem>>, vector<1x1x256xi32>
    %3 = vector.shape_cast %2 : vector<1x1x256xi32> to vector<1x256xi32>
    %c0_5 = arith.constant 0 : index
    %c0_6 = arith.constant 0 : index
    %c0_7 = arith.constant 0 : index
    %4 = vector.load %arg5[%c0_5, %c0_6, %c0_7] : memref<1x1x256xi32, #tpu.memory_space<vmem>>, vector<1x1x256xi32>
    %5 = vector.shape_cast %4 : vector<1x1x256xi32> to vector<1x256xi32>
    %c0_8 = arith.constant 0 : index
    %c0_9 = arith.constant 0 : index
    %c0_10 = arith.constant 0 : index
    %6 = vector.load %arg7[%c0_8, %c0_9, %c0_10] : memref<1x4x8xf32, #tpu.memory_space<vmem>>, vector<1x4x8xf32>
    %7 = vector.shape_cast %6 : vector<1x4x8xf32> to vector<4x8xf32>
    %c0_11 = arith.constant 0 : index
    %c0_12 = arith.constant 0 : index
    %8 = vector.load %arg4[%c0_11, %c0_12] : memref<4x256xf32, #tpu.memory_space<vmem>>, vector<4x256xf32>
    %c0_13 = arith.constant 0 : index
    %c0_14 = arith.constant 0 : index
    %c0_15 = arith.constant 0 : index
    %9 = vector.load %arg3[%c0_13, %c0_14, %c0_15] : memref<1x4x256xf32, #tpu.memory_space<vmem>>, vector<1x4x256xf32>
    %10 = vector.shape_cast %9 : vector<1x4x256xf32> to vector<4x256xf32>
    %cst = arith.constant dense<0xFF800000> : vector<256xf32>
    %11 = vector.multi_reduction <maximumf>, %1, %cst [0] : vector<8x256xf32> to vector<256xf32>
    %12 = vector.shape_cast %11 : vector<256xf32> to vector<1x256xf32>
    %13 = vector.broadcast %12 : vector<1x256xf32> to vector<8x256xf32>
    %14 = arith.subf %1, %13 : vector<8x256xf32>
    %15 = math.exp %14 : vector<8x256xf32>
    %cst_16 = arith.constant dense<0.000000e+00> : vector<256xf32>
    %16 = vector.multi_reduction <add>, %15, %cst_16 [0] : vector<8x256xf32> to vector<256xf32>
    %17 = vector.shape_cast %16 : vector<256xf32> to vector<1x256xf32>
    %18 = math.log %17 : vector<1x256xf32>
    %19 = arith.addf %12, %18 : vector<1x256xf32>
    %20 = tpu.iota {dimensions = array<i32: 0>} : vector<8x256xi32>
    %21 = vector.broadcast %3 : vector<1x256xi32> to vector<8x256xi32>
    %22 = arith.cmpi eq, %20, %21 : vector<8x256xi32>
    %cst_17 = arith.constant 0.000000e+00 : f32
    %23 = vector.broadcast %cst_17 : f32 to vector<8x256xf32>
    %24 = arith.select %22, %1, %23 : vector<8x256xi1>, vector<8x256xf32>
    %cst_18 = arith.constant dense<0.000000e+00> : vector<256xf32>
    %25 = vector.multi_reduction <add>, %24, %cst_18 [0] : vector<8x256xf32> to vector<256xf32>
    %26 = vector.shape_cast %25 : vector<256xf32> to vector<1x256xf32>
    %27 = arith.subf %19, %26 : vector<1x256xf32>
    %cst_19 = arith.constant 0.000000e+00 : f32
    %28 = vector.broadcast %cst_19 : f32 to vector<4x256xf32>
    %c0_i32 = arith.constant 0 : i32
    %29 = vector.broadcast %c0_i32 : i32 to vector<1x256xi32>
    %30 = arith.cmpi eq, %5, %29 : vector<1x256xi32>
    %31 = vector.extract_strided_slice %7 {offsets = [0, 0], sizes = [4, 1], strides = [1, 1]} : vector<4x8xf32> to vector<4x1xf32>
    %cst_20 = arith.constant 0.000000e+00 : f32
    %32 = vector.shape_cast %30 : vector<1x256xi1> to vector<1x256xi1>
    %33 = vector.broadcast %32 : vector<1x256xi1> to vector<4x256xi1>
    %34 = vector.shape_cast %31 : vector<4x1xf32> to vector<4x1xf32>
    %35 = vector.broadcast %34 : vector<4x1xf32> to vector<4x256xf32>
    %36 = vector.broadcast %cst_20 : f32 to vector<4x256xf32>
    %37 = arith.select %33, %35, %36 : vector<4x256xi1>, vector<4x256xf32>
    %38 = arith.addf %28, %37 : vector<4x256xf32>
    %c1_i32 = arith.constant 1 : i32
    %39 = vector.broadcast %c1_i32 : i32 to vector<1x256xi32>
    %40 = arith.cmpi eq, %5, %39 : vector<1x256xi32>
    %41 = vector.extract_strided_slice %7 {offsets = [0, 1], sizes = [4, 1], strides = [1, 1]} : vector<4x8xf32> to vector<4x1xf32>
    %cst_21 = arith.constant 0.000000e+00 : f32
    %42 = vector.shape_cast %40 : vector<1x256xi1> to vector<1x256xi1>
    %43 = vector.broadcast %42 : vector<1x256xi1> to vector<4x256xi1>
    %44 = vector.shape_cast %41 : vector<4x1xf32> to vector<4x1xf32>
    %45 = vector.broadcast %44 : vector<4x1xf32> to vector<4x256xf32>
    %46 = vector.broadcast %cst_21 : f32 to vector<4x256xf32>
    %47 = arith.select %43, %45, %46 : vector<4x256xi1>, vector<4x256xf32>
    %48 = arith.addf %38, %47 : vector<4x256xf32>
    %c2_i32 = arith.constant 2 : i32
    %49 = vector.broadcast %c2_i32 : i32 to vector<1x256xi32>
    %50 = arith.cmpi eq, %5, %49 : vector<1x256xi32>
    %51 = vector.extract_strided_slice %7 {offsets = [0, 2], sizes = [4, 1], strides = [1, 1]} : vector<4x8xf32> to vector<4x1xf32>
    %cst_22 = arith.constant 0.000000e+00 : f32
    %52 = vector.shape_cast %50 : vector<1x256xi1> to vector<1x256xi1>
    %53 = vector.broadcast %52 : vector<1x256xi1> to vector<4x256xi1>
    %54 = vector.shape_cast %51 : vector<4x1xf32> to vector<4x1xf32>
    %55 = vector.broadcast %54 : vector<4x1xf32> to vector<4x256xf32>
    %56 = vector.broadcast %cst_22 : f32 to vector<4x256xf32>
    %57 = arith.select %53, %55, %56 : vector<4x256xi1>, vector<4x256xf32>
    %58 = arith.addf %48, %57 : vector<4x256xf32>
    %c3_i32 = arith.constant 3 : i32
    %59 = vector.broadcast %c3_i32 : i32 to vector<1x256xi32>
    %60 = arith.cmpi eq, %5, %59 : vector<1x256xi32>
    %61 = vector.extract_strided_slice %7 {offsets = [0, 3], sizes = [4, 1], strides = [1, 1]} : vector<4x8xf32> to vector<4x1xf32>
    %cst_23 = arith.constant 0.000000e+00 : f32
    %62 = vector.shape_cast %60 : vector<1x256xi1> to vector<1x256xi1>
    %63 = vector.broadcast %62 : vector<1x256xi1> to vector<4x256xi1>
    %64 = vector.shape_cast %61 : vector<4x1xf32> to vector<4x1xf32>
    %65 = vector.broadcast %64 : vector<4x1xf32> to vector<4x256xf32>
    %66 = vector.broadcast %cst_23 : f32 to vector<4x256xf32>
    %67 = arith.select %63, %65, %66 : vector<4x256xi1>, vector<4x256xf32>
    %68 = arith.addf %58, %67 : vector<4x256xf32>
    %c4_i32 = arith.constant 4 : i32
    %69 = vector.broadcast %c4_i32 : i32 to vector<1x256xi32>
    %70 = arith.cmpi eq, %5, %69 : vector<1x256xi32>
    %71 = vector.extract_strided_slice %7 {offsets = [0, 4], sizes = [4, 1], strides = [1, 1]} : vector<4x8xf32> to vector<4x1xf32>
    %cst_24 = arith.constant 0.000000e+00 : f32
    %72 = vector.shape_cast %70 : vector<1x256xi1> to vector<1x256xi1>
    %73 = vector.broadcast %72 : vector<1x256xi1> to vector<4x256xi1>
    %74 = vector.shape_cast %71 : vector<4x1xf32> to vector<4x1xf32>
    %75 = vector.broadcast %74 : vector<4x1xf32> to vector<4x256xf32>
    %76 = vector.broadcast %cst_24 : f32 to vector<4x256xf32>
    %77 = arith.select %73, %75, %76 : vector<4x256xi1>, vector<4x256xf32>
    %78 = arith.addf %68, %77 : vector<4x256xf32>
    %c5_i32 = arith.constant 5 : i32
    %79 = vector.broadcast %c5_i32 : i32 to vector<1x256xi32>
    %80 = arith.cmpi eq, %5, %79 : vector<1x256xi32>
    %81 = vector.extract_strided_slice %7 {offsets = [0, 5], sizes = [4, 1], strides = [1, 1]} : vector<4x8xf32> to vector<4x1xf32>
    %cst_25 = arith.constant 0.000000e+00 : f32
    %82 = vector.shape_cast %80 : vector<1x256xi1> to vector<1x256xi1>
    %83 = vector.broadcast %82 : vector<1x256xi1> to vector<4x256xi1>
    %84 = vector.shape_cast %81 : vector<4x1xf32> to vector<4x1xf32>
    %85 = vector.broadcast %84 : vector<4x1xf32> to vector<4x256xf32>
    %86 = vector.broadcast %cst_25 : f32 to vector<4x256xf32>
    %87 = arith.select %83, %85, %86 : vector<4x256xi1>, vector<4x256xf32>
    %88 = arith.addf %78, %87 : vector<4x256xf32>
    %c6_i32 = arith.constant 6 : i32
    %89 = vector.broadcast %c6_i32 : i32 to vector<1x256xi32>
    %90 = arith.cmpi eq, %5, %89 : vector<1x256xi32>
    %91 = vector.extract_strided_slice %7 {offsets = [0, 6], sizes = [4, 1], strides = [1, 1]} : vector<4x8xf32> to vector<4x1xf32>
    %cst_26 = arith.constant 0.000000e+00 : f32
    %92 = vector.shape_cast %90 : vector<1x256xi1> to vector<1x256xi1>
    %93 = vector.broadcast %92 : vector<1x256xi1> to vector<4x256xi1>
    %94 = vector.shape_cast %91 : vector<4x1xf32> to vector<4x1xf32>
    %95 = vector.broadcast %94 : vector<4x1xf32> to vector<4x256xf32>
    %96 = vector.broadcast %cst_26 : f32 to vector<4x256xf32>
    %97 = arith.select %93, %95, %96 : vector<4x256xi1>, vector<4x256xf32>
    %98 = arith.addf %88, %97 : vector<4x256xf32>
    %c7_i32 = arith.constant 7 : i32
    %99 = vector.broadcast %c7_i32 : i32 to vector<1x256xi32>
    %100 = arith.cmpi eq, %5, %99 : vector<1x256xi32>
    %101 = vector.extract_strided_slice %7 {offsets = [0, 7], sizes = [4, 1], strides = [1, 1]} : vector<4x8xf32> to vector<4x1xf32>
    %cst_27 = arith.constant 0.000000e+00 : f32
    %102 = vector.shape_cast %100 : vector<1x256xi1> to vector<1x256xi1>
    %103 = vector.broadcast %102 : vector<1x256xi1> to vector<4x256xi1>
    %104 = vector.shape_cast %101 : vector<4x1xf32> to vector<4x1xf32>
    %105 = vector.broadcast %104 : vector<4x1xf32> to vector<4x256xf32>
    %106 = vector.broadcast %cst_27 : f32 to vector<4x256xf32>
    %107 = arith.select %103, %105, %106 : vector<4x256xi1>, vector<4x256xf32>
    %108 = arith.addf %98, %107 : vector<4x256xf32>
    %c0_i32_28 = arith.constant 0 : i32
    %109 = vector.broadcast %c0_i32_28 : i32 to vector<1x256xi32>
    %110 = arith.cmpi ne, %3, %109 : vector<1x256xi32>
    %111 = arith.extui %110 : vector<1x256xi1> to vector<1x256xi32>
    %112 = arith.sitofp %111 : vector<1x256xi32> to vector<1x256xf32>
    %113 = vector.extract_strided_slice %108 {offsets = [0, 0], sizes = [1, 256], strides = [1, 1]} : vector<4x256xf32> to vector<1x256xf32>
    %114 = vector.extract_strided_slice %108 {offsets = [2, 0], sizes = [1, 256], strides = [1, 1]} : vector<4x256xf32> to vector<1x256xf32>
    %115 = arith.addf %113, %114 : vector<1x256xf32>
    %cst_29 = arith.constant 5.000000e-01 : f32
    %116 = vector.broadcast %cst_29 : f32 to vector<1x256xf32>
    %117 = arith.mulf %115, %116 : vector<1x256xf32>
    %118 = vector.extract_strided_slice %108 {offsets = [1, 0], sizes = [1, 256], strides = [1, 1]} : vector<4x256xf32> to vector<1x256xf32>
    %119 = vector.extract_strided_slice %108 {offsets = [3, 0], sizes = [1, 256], strides = [1, 1]} : vector<4x256xf32> to vector<1x256xf32>
    %120 = arith.addf %118, %119 : vector<1x256xf32>
    %cst_30 = arith.constant 5.000000e-01 : f32
    %121 = vector.broadcast %cst_30 : f32 to vector<1x256xf32>
    %122 = arith.mulf %120, %121 : vector<1x256xf32>
    %123 = vector.extract_strided_slice %108 {offsets = [2, 0], sizes = [1, 256], strides = [1, 1]} : vector<4x256xf32> to vector<1x256xf32>
    %124 = vector.extract_strided_slice %108 {offsets = [0, 0], sizes = [1, 256], strides = [1, 1]} : vector<4x256xf32> to vector<1x256xf32>
    %125 = arith.subf %123, %124 : vector<1x256xf32>
    %cst_31 = arith.constant 1.000000e+00 : f32
    %126 = vector.broadcast %cst_31 : f32 to vector<1x256xf32>
    %127 = arith.select %110, %125, %126 : vector<1x256xi1>, vector<1x256xf32>
    %128 = vector.extract_strided_slice %108 {offsets = [3, 0], sizes = [1, 256], strides = [1, 1]} : vector<4x256xf32> to vector<1x256xf32>
    %129 = vector.extract_strided_slice %108 {offsets = [1, 0], sizes = [1, 256], strides = [1, 1]} : vector<4x256xf32> to vector<1x256xf32>
    %130 = arith.subf %128, %129 : vector<1x256xf32>
    %cst_32 = arith.constant 1.000000e+00 : f32
    %131 = vector.broadcast %cst_32 : f32 to vector<1x256xf32>
    %132 = arith.select %110, %130, %131 : vector<1x256xi1>, vector<1x256xf32>
    %133 = vector.extract_strided_slice %8 {offsets = [2, 0], sizes = [1, 256], strides = [1, 1]} : vector<4x256xf32> to vector<1x256xf32>
    %134 = tpu.reciprocal %133 : vector<1x256xf32> -> vector<1x256xf32>
    %135 = vector.extract_strided_slice %8 {offsets = [3, 0], sizes = [1, 256], strides = [1, 1]} : vector<4x256xf32> to vector<1x256xf32>
    %136 = tpu.reciprocal %135 : vector<1x256xf32> -> vector<1x256xf32>
    %137 = vector.extract_strided_slice %8 {offsets = [0, 0], sizes = [1, 256], strides = [1, 1]} : vector<4x256xf32> to vector<1x256xf32>
    %138 = arith.subf %117, %137 : vector<1x256xf32>
    %cst_33 = arith.constant 1.000000e+01 : f32
    %139 = vector.broadcast %cst_33 : f32 to vector<1x256xf32>
    %140 = arith.mulf %139, %134 : vector<1x256xf32>
    %141 = arith.mulf %138, %140 : vector<1x256xf32>
    %142 = vector.extract_strided_slice %8 {offsets = [1, 0], sizes = [1, 256], strides = [1, 1]} : vector<4x256xf32> to vector<1x256xf32>
    %143 = arith.subf %122, %142 : vector<1x256xf32>
    %cst_34 = arith.constant 1.000000e+01 : f32
    %144 = vector.broadcast %cst_34 : f32 to vector<1x256xf32>
    %145 = arith.mulf %144, %136 : vector<1x256xf32>
    %146 = arith.mulf %143, %145 : vector<1x256xf32>
    %147 = arith.mulf %127, %134 : vector<1x256xf32>
    %148 = math.log %147 : vector<1x256xf32>
    %cst_35 = arith.constant 5.000000e+00 : f32
    %149 = vector.broadcast %cst_35 : f32 to vector<1x256xf32>
    %150 = arith.mulf %148, %149 : vector<1x256xf32>
    %151 = arith.mulf %132, %136 : vector<1x256xf32>
    %152 = math.log %151 : vector<1x256xf32>
    %cst_36 = arith.constant 5.000000e+00 : f32
    %153 = vector.broadcast %cst_36 : f32 to vector<1x256xf32>
    %154 = arith.mulf %152, %153 : vector<1x256xf32>
    %155 = vector.extract_strided_slice %10 {offsets = [0, 0], sizes = [1, 256], strides = [1, 1]} : vector<4x256xf32> to vector<1x256xf32>
    %156 = arith.subf %155, %141 : vector<1x256xf32>
    %157 = math.absf %156 : vector<1x256xf32>
    %158 = vector.extract_strided_slice %10 {offsets = [1, 0], sizes = [1, 256], strides = [1, 1]} : vector<4x256xf32> to vector<1x256xf32>
    %159 = arith.subf %158, %146 : vector<1x256xf32>
    %160 = math.absf %159 : vector<1x256xf32>
    %161 = arith.addf %157, %160 : vector<1x256xf32>
    %162 = vector.extract_strided_slice %10 {offsets = [2, 0], sizes = [1, 256], strides = [1, 1]} : vector<4x256xf32> to vector<1x256xf32>
    %163 = arith.subf %162, %150 : vector<1x256xf32>
    %164 = math.absf %163 : vector<1x256xf32>
    %165 = arith.addf %161, %164 : vector<1x256xf32>
    %166 = vector.extract_strided_slice %10 {offsets = [3, 0], sizes = [1, 256], strides = [1, 1]} : vector<4x256xf32> to vector<1x256xf32>
    %167 = arith.subf %166, %154 : vector<1x256xf32>
    %168 = math.absf %167 : vector<1x256xf32>
    %169 = arith.addf %165, %168 : vector<1x256xf32>
    %cst_37 = arith.constant 0.000000e+00 : f32
    %170 = vector.broadcast %cst_37 : f32 to vector<1x256xf32>
    %171 = arith.select %110, %170, %27 : vector<1x256xi1>, vector<1x256xf32>
    %c0_38 = arith.constant 0 : index
    %c0_39 = arith.constant 0 : index
    %c0_40 = arith.constant 0 : index
    %172 = vector.load %arg8[%c0_38, %c0_39, %c0_40] : memref<1x1x256xf32, #tpu.memory_space<vmem>>, vector<1x1x256xf32>
    %173 = vector.shape_cast %172 : vector<1x1x256xf32> to vector<1x256xf32>
    %174 = vector.shape_cast %171 : vector<1x256xf32> to vector<1x1x256xf32>
    tpu.vector_store %arg8[%c0_38, %c0_39, %c0_40], %174 {strides = array<i32>} : memref<1x1x256xf32, #tpu.memory_space<vmem>>, vector<1x1x256xf32>,
    %cst_41 = arith.constant 2.500000e-01 : f32
    %175 = vector.broadcast %cst_41 : f32 to vector<1x256xf32>
    %176 = arith.mulf %175, %169 : vector<1x256xf32>
    %177 = arith.addf %27, %176 : vector<1x256xf32>
    %178 = arith.mulf %112, %177 : vector<1x256xf32>
    %179 = vector.shape_cast %178 : vector<1x256xf32> to vector<1x1x256xf32>
    %cst_42 = arith.constant dense<0.000000e+00> : vector<1xf32>
    %180 = vector.multi_reduction <add>, %179, %cst_42 [1, 2] : vector<1x1x256xf32> to vector<1xf32>
    %181 = vector.shape_cast %180 : vector<1xf32> to vector<1x1x1xf32>
    %182 = vector.extract %181[0, 0, 0] : f32 from vector<1x1x1xf32>
    %183 = tpu.iota {dimensions = array<i32: 1>} : vector<1x128xi32>
    %c0_i32_43 = arith.constant 0 : i32
    %184 = vector.broadcast %c0_i32_43 : i32 to vector<1x128xi32>
    %185 = arith.cmpi eq, %183, %184 : vector<1x128xi32>
    %cst_44 = arith.constant 0.000000e+00 : f32
    %186 = vector.broadcast %182 : f32 to vector<1x128xf32>
    %187 = vector.broadcast %cst_44 : f32 to vector<1x128xf32>
    %188 = arith.select %185, %186, %187 : vector<1x128xi1>, vector<1x128xf32>
    %c0_45 = arith.constant 0 : index
    %c0_46 = arith.constant 0 : index
    %c0_47 = arith.constant 0 : index
    %189 = vector.load %arg9[%c0_45, %c0_46, %c0_47] : memref<1x1x128xf32, #tpu.memory_space<vmem>>, vector<1x1x128xf32>
    %190 = vector.shape_cast %189 : vector<1x1x128xf32> to vector<1x128xf32>
    %191 = vector.shape_cast %188 : vector<1x128xf32> to vector<1x1x128xf32>
    tpu.vector_store %arg9[%c0_45, %c0_46, %c0_47], %191 {strides = array<i32>} : memref<1x1x128xf32, #tpu.memory_space<vmem>>, vector<1x1x128xf32>,
    return
  }
  func.func @transform_0(%arg0: i32, %arg1: i32) -> (i32, i32, i32) {
    %c0_i32 = arith.constant 0 : i32
    %c0_i32_0 = arith.constant 0 : i32
    return %arg0, %c0_i32, %arg1 : i32, i32, i32
  }
  func.func @transform_1(%arg0: i32, %arg1: i32) -> (i32, i32, i32) {
    %c0_i32 = arith.constant 0 : i32
    %c0_i32_0 = arith.constant 0 : i32
    return %arg0, %c0_i32, %arg1 : i32, i32, i32
  }
  func.func @transform_2(%arg0: i32, %arg1: i32) -> (i32, i32) {
    %c0_i32 = arith.constant 0 : i32
    %c0_i32_0 = arith.constant 0 : i32
    return %c0_i32, %arg1 : i32, i32
  }
  func.func @transform_3(%arg0: i32, %arg1: i32) -> (i32, i32, i32) {
    %c0_i32 = arith.constant 0 : i32
    %c0_i32_0 = arith.constant 0 : i32
    return %arg0, %c0_i32, %arg1 : i32, i32, i32
  }
  func.func @transform_4(%arg0: i32, %arg1: i32) -> (i32, i32, i32) {
    %c0_i32 = arith.constant 0 : i32
    %c0_i32_0 = arith.constant 0 : i32
    return %arg0, %c0_i32, %arg1 : i32, i32, i32
  }
  func.func @transform_5(%arg0: i32, %arg1: i32) -> (i32, i32, i32) {
    %c0_i32 = arith.constant 0 : i32
    %c0_i32_0 = arith.constant 0 : i32
    %c0_i32_1 = arith.constant 0 : i32
    return %arg0, %c0_i32, %c0_i32_0 : i32, i32, i32
  }
  func.func @transform_6(%arg0: i32, %arg1: i32) -> (i32, i32, i32) {
    %c0_i32 = arith.constant 0 : i32
    %c0_i32_0 = arith.constant 0 : i32
    return %arg0, %c0_i32, %arg1 : i32, i32, i32
  }
  func.func @transform_7(%arg0: i32, %arg1: i32) -> (i32, i32, i32) {
    %c0_i32 = arith.constant 0 : i32
    %c0_i32_0 = arith.constant 0 : i32
    return %arg0, %c0_i32, %arg1 : i32, i32, i32
  }
}

</mosaic_0001>

<bundles_post_ra>
// kernel: neg.0
= control target key start
LH: loop header
LB: loop body
LE: loop exit
PB: predicated region body
PF: predicated region fallthrough
CT: control target
= control target key end

     0   :  { %s72_s0 = inlined_call_operand.vmem [shape: f32[2,1,256], index: 0, kind: input, shape index: {}]   ;;  %s73_s1 = inlined_call_operand.vmem [shape: f32[2,1,256], index: 1, kind: output, shape index: {}]  }
   0x1   :  { %v2_v0 = vld [vmem:[%s72_s0] sm:$0x1]  ;;  %v32_v1 = vld [vmem:[%s72_s0 + $0x2] sm:$0x1]  ;;  %v34_v2 = vld [vmem:[%s72_s0 + $0x1] sm:$0x1] }
   0x2   :  { %v5_v3 = vxor.u32 2147483648, %v2_v0  ;;  %v12_v4 = vxor.u32 2147483648, %v32_v1  ;;  %v20_v5 = vxor.u32 2147483648, %v34_v2  ;;  %v36_v6 = vld [vmem:[%s72_s0 + $0x3] sm:$0x1] }
   0x3   :  { %v28_v7 = vxor.u32 2147483648, %v36_v6 }
   0x4   :  { %7 = vst [vmem:[%s73_s1] sm:$0x1] %v5_v3  ;;  %33 = vst [vmem:[%s73_s1 + $0x2] sm:$0x1] %v12_v4 }
   0x5   :  { %35 = vst [vmem:[%s73_s1 + $0x1] sm:$0x1] %v20_v5  ;;  %37 = vst [vmem:[%s73_s1 + $0x3] sm:$0x1] %v28_v7 }

// kernel: multibox_loss.2
= control target key start
LH: loop header
LB: loop body
LE: loop exit
PB: predicated region body
PF: predicated region fallthrough
CT: control target
= control target key end

     0   :  { %s794_s15 = smov 0   ;;  %s796_s16 = smov 0   ;;  %s880_s0 = inlined_call_operand.vmem [shape: f32[2,8,4], index: 0, kind: input, shape index: {}]   ;;  %s881_s1 = inlined_call_operand.vmem [shape: f32[4,256], index: 1, kind: input, shape index: {}]   ;;  %s882_s2 = inlined_call_operand.vmem [shape: f32[2,1,256], index: 2, kind: output, shape index: {0}]   ;;  %s883_s3 = inlined_call_operand.vmem [shape: s32[2,1,256], index: 3, kind: output, shape index: {1}]   ;;  %s884_s4 = inlined_call_operand.vmem [shape: s32[2,8,1], index: 4, kind: output, shape index: {2}]  }
   0x1   :  { %s798_s17 = smov 0  }
   0x2 LB: > { %s27_s18 = sadd.s32 1, %s755_s16  ;;  %p685_p0 = scmp.ge.s32.totalorder %s759_s17, 1  ;;  %s759_s17 = sphi %s798_s17, %s15_s17   ;;  %s755_s16 = sphi %s796_s16, %s888_s16   ;;  %s751_s15 = sphi %s794_s15, %s887_s15  }
   0x3   : > { %p29_p1 = scmp.ge.s32.totalorder %s27_s18, 2  ;;  %p193_p2 = scmp.lt.s32.totalorder %s759_s17, 3 }
   0x5   : > { %s890_s18 = smov (%p29_p1, %s27_s18), 0  ;;  %p194_p3 = pnand %p685_p0, %p193_p2 }
   0x6   : > { %p238_p4 = scmp.lt.s32.totalorder (!%p194_p3), %s751_s15, 1  ;;  %vm474_vm0 = vcmask (!%p194_p3), 7168   ;;  %v761_v0 = vmov (!%p194_p3), 2   ;;  %v762_v1 = vmov (!%p194_p3), -1.0   ;;  %v763_v2 = vmov (!%p194_p3), 3   ;;  %s764_s26 = smov (!%p194_p3), 2  }
   0x7   : > { %197 = sbr.rel (%p194_p3) target bundleno = 844 (0x34c), region = 28  ;;  %727 = vset.pattern.permute.xlu1 (!%p194_p3), %v761_v0  ;;  %475 = vst.msk [vmem:[#allocation2] sm:$0xff] (!%p194_p3), %vm474_vm0, %v762_v1  ;;  %729 = vset.pattern.permute.xlu0 (!%p194_p3), %v763_v2  ;;  %v765_v4 = vmov (!%p194_p3), 0   ;;  %v766_v5 = vmov (!%p194_p3), 1   ;;  %s767_s27 = smov (!%p194_p3), 127   ;;  %v284_v10 = vlaneseq (!%p194_p3) }
   0x8   : > { %v691_v16 = vld [vmem:[%s881_s1 + $0x2] ss:$4 sm:$0x3] (!%p194_p3)  ;;  %v271_v17 = vld [vmem:[%s881_s1] ss:$4 sm:$0x3] (!%p194_p3) }
   0x9   : > { %v827_v12 = vshrl.u32 (!%p194_p3), %v284_v10, 7  ;;  %v690_v18 = vld [vmem:[%s881_s1 + $0x1] ss:$4 sm:$0x3] (!%p194_p3)  ;;  %v366_v30 = vsub.f32 (!%p194_p3), %v691_v16, %v271_v17  ;;  %vm853_vm3 = vcmp.lt.s32.totalorder (!%p194_p3), %v284_v10, 256 }
   0xa   : > { %v692_v19 = vld [vmem:[%s881_s1 + $0x3] ss:$4 sm:$0x3] (!%p194_p3) }
   0xb   : > { %v286_v13 = vsub.s32 (!%p194_p3), 0, %v827_v12  ;;  %v290_v14 = vsub.s32 (!%p194_p3), 1, %v827_v12  ;;  %v367_v31 = vsub.f32 (!%p194_p3), %v692_v19, %v690_v18 }
   0xd   : > { %v287_v20 = vrot.slane (!%p194_p3), %v691_v16, %v286_v13  ;;  %v291_v21 = vrot.slane (!%p194_p3), %v691_v16, %v290_v14  ;;  %v304_v22 = vrot.slane (!%p194_p3), %v271_v17, %v286_v13  ;;  %v308_v23 = vrot.slane (!%p194_p3), %v271_v17, %v290_v14 }
   0xe   : > { %s892_s15 = smov (!%p238_p4, %s751_s15), 1  ;;  %v342_v24 = vrot.slane %v690_v18, %v286_v13  ;;  %v346_v25 = vrot.slane %v690_v18, %v290_v14  ;;  %v325_v26 = vrot.slane %v692_v19, %v286_v13  ;;  %v329_v27 = vrot.slane %v692_v19, %v290_v14 }
   0xf   : > { %s686_s19 = sshll.u32 %s892_s15, 3  ;;  %v368_v40 = vmul.f32 %v367_v31, %v366_v30  ;;  %s687_s10 = sshll.u32 %s892_s15, 1 }
  0x10   : > { %s241_s22 = scalar_lea.vmem %s880_s0, %s686_s19  ;;  %s822_s25 = scalar_lea.vmem %s884_s4, %s686_s19 }
  0x11   : > { %v270_v3 = vld [vmem:[%s241_s22] sm:$0xff]  ;;  %476 = vst.msk [vmem:[%s822_s25] sm:$0xff] %vm474_vm0, %v765_v4  ;;  %v378_v45 = vrot.slane %v368_v40, %v286_v13  ;;  %v382_v46 = vrot.slane %v368_v40, %v290_v14  ;;  %s255_s13 = scalar_lea.vmem %s882_s2, %s687_s10  ;;  %s264_s20 = scalar_lea.vmem %s883_s3, %s687_s10 }
  0x12   : > { %357 = vrot.lane.b32.xlu0 %v270_v3, %s764_s26  ;;  %280 = vperm.xlu1 %727, %v270_v3   ;;  %v506_v40 = vld [vmem:[#allocation2] sm:$0xff] }
  0x16   : > { %728 = vset.pattern.permute.xlu1 %v765_v4  ;;  %v768_v4 = vmov 1966171168  }
  0x17   : > { %297 = vperm.xlu1 %728, %v270_v3  }
  0x1b   : > { %730 = vset.pattern.permute.xlu1 %v766_v5  ;;  %v435_v5 = vunpack.c.l.s4 %v768_v4 }
  0x1c   : > { %335 = vperm.xlu1 %730, %v270_v3  }
  0x20   : > { %731 = vset.pattern.permute.xlu1 %v761_v0 }
  0x84   : > { %v358_v6 = vpop.permute.xlu0 %357 }
  0x85   : > { %v360_v7 = vsub.f32 %v270_v3, %v358_v6 }
  0x87   : > { %362 = vrot.lane.b32.xlu0 %v360_v7, %s767_s27 }
  0x8b   : > { %318 = vperm.xlu0 %729, %v270_v3  }
  0x8f   : > { %732 = vset.pattern.permute.xlu0 %v761_v0 }
  0x91   : > { %v281_v11 = vpop.permute.xlu1 %280 }
  0x92   : > { %v294_v32 = vmin.f32 %v281_v11, %v287_v20  ;;  %v295_v33 = vmin.f32 %v281_v11, %v291_v21  ;;  %v436_v11 = vunpack.c.0.s8 %v435_v5 }
  0x94   : > { %v439_v17 = vsub.s32 %v436_v11, %v827_v12 }
  0x96   : > { %v298_v15 = vpop.permute.xlu1 %297 }
  0x97   : > { %v311_v34 = vmax.f32 %v298_v15, %v304_v22  ;;  %v312_v35 = vmax.f32 %v298_v15, %v308_v23 }
  0x99   : > { %v313_v41 = vsub.f32 %v294_v32, %v311_v34  ;;  %v314_v42 = vsub.f32 %v295_v33, %v312_v35 }
  0x9b   : > { %v336_v28 = vpop.permute.xlu1 %335  ;;  %v315_v47 = vmax.f32 %v313_v41, 0.0  ;;  %v316_v48 = vmax.f32 %v314_v42, 0.0 }
  0x9c   : > { %v349_v36 = vmax.f32 %v336_v28, %v342_v24  ;;  %v350_v37 = vmax.f32 %v336_v28, %v346_v25 }
  0xf9   : > { %v363_v8 = vpop.permute.xlu0 %362 }
  0xfa   : > { %v365_v9 = vmul.f32 %v363_v8, %v360_v7 }
  0xfc   : > { %371 = vperm.xlu1 %731, %v365_v9  }
 0x10a   : > { %v319_v29 = vpop.permute.xlu0 %318 }
 0x10b   : > { %v332_v38 = vmin.f32 %v319_v29, %v325_v26  ;;  %v333_v39 = vmin.f32 %v319_v29, %v329_v27 }
 0x10d   : > { %v351_v43 = vsub.f32 %v332_v38, %v349_v36  ;;  %v352_v44 = vsub.f32 %v333_v39, %v350_v37  ;;  %v481_v39 = vand.u32 127, %v284_v10 }
 0x10f   : > { %v353_v49 = vmax.f32 %v351_v43, 0.0  ;;  %v354_v50 = vmax.f32 %v352_v44, 0.0  ;;  %v482_v41 = vadd.s32 128, %v481_v39 }
 0x111   : > { %v355_v52 = vmul.f32 %v353_v49, %v315_v47  ;;  %v356_v53 = vmul.f32 %v354_v50, %v316_v48 }
 0x17b   : > { %v372_v51 = vpop.permute.xlu1 %371 }
 0x17c   : > { %v385_v54 = vadd.f32 %v378_v45, %v372_v51  ;;  %v386_v55 = vadd.f32 %v382_v46, %v372_v51 }
 0x17e   : > { %v387_v56 = vsub.f32 %v385_v54, %v355_v52  ;;  %v388_v57 = vsub.f32 %v386_v55, %v356_v53 }
 0x180   : > { %v389_v58 = vmax.f32 %v387_v56, 1e-10  ;;  %v390_v59 = vmax.f32 %v388_v57, 1e-10  ;;  %v508_v56 = vld [vmem:[%s822_s25] sm:$0xff] }
 0x182   : > { %733 = vrcp.f32 %v389_v58 }
 0x183   : > { %735 = vrcp.f32 %v390_v59 }
 0x18c   : > { %v734_v60 = vpop.eup %733 }
 0x18d   : > { %v736_v61 = vpop.eup %735  ;;  %v393_v62 = vmul.f32 %v734_v60, %v355_v52 }
 0x18e   : > { %v394_v63 = vmul.f32 %v736_v61, %v356_v53 }
 0x18f   : > { %v395_v0 = vrot.slane %v393_v62, 4 }
 0x190   : > { %v401_v1 = vrot.slane %v394_v63, 4  ;;  %v477_v2 = vmax.f32 %v393_v62, %v394_v63 }
 0x191   : > { %v396_v3 = vmax.f32 %v393_v62, %v395_v0 }
 0x192   : > { %v402_v6 = vmax.f32 %v394_v63, %v401_v1  ;;  %478 = vmax.xlane.f32.xlu0 %v477_v2 }
 0x193   : > { %v397_v7 = vrot.slane %v396_v3, 2 }
 0x194   : > { %v403_v8 = vrot.slane %v402_v6, 2 }
 0x195   : > { %v398_v9 = vmax.f32 %v396_v3, %v397_v7 }
 0x196   : > { %v404_v13 = vmax.f32 %v402_v6, %v403_v8 }
 0x197   : > { %v399_v14 = vrot.slane %v398_v9, 1 }
 0x198   : > { %v405_v15 = vrot.slane %v404_v13, 1 }
 0x199   : > { %v400_v16 = vmax.f32 %v398_v9, %v399_v14 }
 0x19a   : > { %v406_v18 = vmax.f32 %v404_v13, %v405_v15 }
 0x19b   : > { %vm409_vm1 = vcmp.eq.f32.partialorder %v393_v62, %v400_v16 }
 0x19c   : > { %vm410_vm2 = vcmp.eq.f32.partialorder %v394_v63, %v406_v18  ;;  %v411_v19 = vsel %vm409_vm1, %v827_v12, 8  ;;  %v433_v20 = vcombine.low %v400_v16, %v406_v18 }
 0x19d   : > { %v412_v21 = vsel %vm410_vm2, %v827_v12, 8  ;;  %v413_v22 = vrot.slane %v411_v19, 4 }
 0x19e   : > { %v422_v23 = vrot.slane %v412_v21, 4  ;;  %v440_v24 = vrot.slane %v433_v20, %v439_v17 }
 0x19f   : > { %vm414_vm4 = vcmp.lt.s32.totalorder %v411_v19, %v413_v22 }
 0x1a0   : > { %v415_v26 = vsel %vm414_vm4, %v411_v19, %v413_v22  ;;  %vm423_vm5 = vcmp.lt.s32.totalorder %v412_v21, %v422_v23  ;;  %v447_v27 = vrot.slane %v440_v24, %v439_v17 }
 0x1a1   : > { %v416_v28 = vrot.slane %v415_v26, 2  ;;  %v424_v12 = vsel %vm423_vm5, %v412_v21, %v422_v23 }
 0x1a2   : > { %v425_v29 = vrot.slane %v424_v12, 2  ;;  %453 = vst.msk [vmem:[%s255_s13] sm:$0x3] %vm853_vm3, %v447_v27 }
 0x1a3   : > { %vm417_vm6 = vcmp.lt.s32.totalorder %v415_v26, %v416_v28 }
 0x1a4   : > { %v418_v30 = vsel %vm417_vm6, %v415_v26, %v416_v28  ;;  %vm426_vm7 = vcmp.lt.s32.totalorder %v424_v12, %v425_v29 }
 0x1a5   : > { %v419_v31 = vrot.slane %v418_v30, 1  ;;  %v427_v32 = vsel %vm426_vm7, %v424_v12, %v425_v29 }
 0x1a6   : > { %v428_v33 = vrot.slane %v427_v32, 1 }
 0x1a7   : > { %vm420_vm8 = vcmp.lt.s32.totalorder %v418_v30, %v419_v31 }
 0x1a8   : > { %v421_v34 = vsel %vm420_vm8, %v418_v30, %v419_v31  ;;  %vm429_vm9 = vcmp.lt.s32.totalorder %v427_v32, %v428_v33 }
 0x1a9   : > { %v430_v35 = vsel %vm429_vm9, %v427_v32, %v428_v33 }
 0x1aa   : > { %v454_v36 = vcombine.low %v421_v34, %v430_v35 }
 0x1ac   : > { %v461_v37 = vrot.slane %v454_v36, %v439_v17 }
 0x1ae   : > { %v468_v38 = vrot.slane %v461_v37, %v439_v17 }
 0x1b0   : > { %469 = vst.msk [vmem:[%s264_s20] sm:$0x3] %vm853_vm3, %v468_v38 }
 0x21f   : > { %v479_v42 = vpop.xlane.xlu0 %478 }
 0x220   : > { %vm483_vm10 = vcmp.eq.f32.partialorder %v393_v62, %v479_v42  ;;  %vm484_vm11 = vcmp.eq.f32.partialorder %v394_v63, %v479_v42  ;;  %v513_v43 = vmax.f32 %v479_v42, %v506_v40  ;;  %vm507_vm14 = vcmp.gt.f32.partialorder %v479_v42, %v506_v40 }
 0x221   : > { %v485_v44 = vsel %vm483_vm10, %v481_v39, 256  ;;  %v486_v45 = vsel %vm484_vm11, %v482_v41, 256 }
 0x222   : > { %514 = vst.msk [vmem:[#allocation2] sm:$0xff] %vm474_vm0, %v513_v43  ;;  %vm487_vm12 = vcmp.lt.s32.totalorder %v485_v44, %v486_v45 }
 0x223   : > { %v488_v46 = vsel %vm487_vm12, %v485_v44, %v486_v45 }
 0x224   : > { %v490_v47 = vshra.s32 %v488_v46, 16  ;;  %v489_v49 = vand.u32 65535, %v488_v46 }
 0x226   : > { %v492_v48 = vcvt.s32.f32 %v490_v47  ;;  %v491_v10 = vcvt.s32.f32 %v489_v49 }
 0x228   : > { %493 = vmin.xlane.f32.xlu1 %v492_v48 }
 0x2b5   : > { %v494_v50 = vpop.xlane.xlu1 %493 }
 0x2b6   : > { %vm495_vm13 = vcmp.eq.f32.partialorder %v492_v48, %v494_v50  ;;  %v500_v52 = vcvt.f32.s32 %v494_v50 }
 0x2b7   : > { %v496_v51 = vsel %vm495_vm13, %v491_v10, inf }
 0x2b8   : > { %497 = vmin.xlane.f32.xlu0 %v496_v51  ;;  %v501_v54 = vshll.u32 %v500_v52, 16 }
 0x345   : > { %v498_v53 = vpop.xlane.xlu0 %497 }
 0x346   : > { %v499_v55 = vcvt.f32.s32 %v498_v53 }
 0x348   : > { %v502_v57 = vadd.s32 %v501_v54, %v499_v55 }
 0x34a   : > { %v509_v58 = vsel %vm507_vm14, %v502_v57, %v508_v56 }
 0x34b   : > { %511 = vst.msk [vmem:[%s822_s25] sm:$0xff] %vm474_vm0, %v509_v58 }
 0x34c PF: > { %s15_s17 = sadd.s32 1, %s759_s17   ;;  %s887_s15 = smov %s755_s16 }
 0x34d   : > { %p12_p5 = scmp.ge.s32.totalorder %s15_s17, 4   ;;  %s888_s16 = smov %s890_s18 }
 0x34f   :  { %14 = sbr.rel (!%p12_p5) target bundleno = 2 (0x2), region = 92 }

// kernel: multibox_loss.3
= control target key start
LH: loop header
LB: loop body
LE: loop exit
PB: predicated region body
PF: predicated region fallthrough
CT: control target
= control target key end

     0   :  { %s1327_s24 = smov 0   ;;  %s1329_s25 = smov 0   ;;  %s1582_s0 = inlined_call_operand.vmem [shape: f32[2,8,256], index: 0, kind: input, shape index: {}]   ;;  %s1583_s1 = inlined_call_operand.vmem [shape: f32[2,4,256], index: 1, kind: input, shape index: {}]   ;;  %s1584_s2 = inlined_call_operand.vmem [shape: f32[4,256], index: 2, kind: input, shape index: {}]   ;;  %s1585_s3 = inlined_call_operand.vmem [shape: s32[2,1,256], index: 3, kind: input, shape index: {}]   ;;  %s1586_s4 = inlined_call_operand.vmem [shape: s32[2,1,256], index: 4, kind: input, shape index: {}]   ;;  %s1587_s5 = inlined_call_operand.vmem [shape: f32[2,4,8], index: 5, kind: input, shape index: {}]   ;;  %s1588_s6 = inlined_call_operand.vmem [shape: f32[2,1,256], index: 6, kind: output, shape index: {0}]   ;;  %s1589_s7 = inlined_call_operand.vmem [shape: f32[2,1,128], index: 7, kind: output, shape index: {1}]  }
   0x1   :  { %s1331_s26 = smov 0  }
   0x2 LB: > { %s30_s27 = sadd.s32 1, %s1270_s25  ;;  %p1175_p0 = scmp.ge.s32.totalorder %s1274_s26, 1  ;;  %s1274_s26 = sphi %s1331_s26, %s18_s26   ;;  %s1270_s25 = sphi %s1329_s25, %s1615_s25   ;;  %s1266_s24 = sphi %s1327_s24, %s1614_s24  }
   0x3   : > { %p32_p1 = scmp.ge.s32.totalorder %s30_s27, 2  ;;  %p332_p2 = scmp.lt.s32.totalorder %s1274_s26, 3 }
   0x5   : > { %s1617_s27 = smov (%p32_p1, %s30_s27), 0  ;;  %p333_p3 = pnand %p1175_p0, %p332_p2 }
   0x6   : > { %p412_p4 = scmp.lt.s32.totalorder (!%p333_p3), %s1266_s24, 1  ;;  %v1276_v0 = vmov (!%p333_p3), 2   ;;  %v1277_v1 = vmov (!%p333_p3), 0   ;;  %v1278_v8 = vmov (!%p333_p3), 3   ;;  %v1279_v9 = vmov (!%p333_p3), 1  }
   0x7   : > { %336 = sbr.rel (%p333_p3) target bundleno = 437 (0x1b5), region = 44  ;;  %1231 = vset.pattern.permute.xlu1 (!%p333_p3), %v1276_v0  ;;  %1229 = vset.pattern.permute.xlu0 (!%p333_p3), %v1277_v1  ;;  %v1280_v11 = vmov (!%p333_p3), 4   ;;  %v1281_v12 = vmov (!%p333_p3), 5   ;;  %v1282_v17 = vmov (!%p333_p3), 6   ;;  %v1283_v18 = vmov (!%p333_p3), 7  }
   0x8   : > { %v517_v36 = vlaneseq (!%p333_p3) }
   0xa   : > { %v1379_v37 = vshrl.u32 (!%p333_p3), %v517_v36, 7  ;;  %vm913_vm10 = vcmp.lt.s32.totalorder (!%p333_p3), %v517_v36, 256 }
   0xc   : > { %v1386_v41 = vsub.s32 (!%p333_p3), 0, %v1379_v37  ;;  %v1389_v42 = vsub.s32 (!%p333_p3), 1, %v1379_v37 }
   0xe   : > { %s1619_s24 = smov (!%p412_p4, %s1266_s24), 1 }
   0xf   : > { %s1182_s28 = sshll.u32 %s1619_s24, 2  ;;  %s1349_s29 = sshll.u32 %s1619_s24, 1 }
  0x10   : > { %s458_s9 = scalar_lea.vmem %s1587_s5, %s1182_s28  ;;  %s444_s12 = scalar_lea.vmem %s1585_s3, %s1349_s29 }
  0x11   : > { %v478_v2 = vld [vmem:[%s458_s9] sm:$0xf]  ;;  %s1190_s13 = sshll.u32 %s1619_s24, 4  ;;  %s453_s19 = scalar_lea.vmem %s1586_s4, %s1349_s29 }
  0x12   : > { %v477_v3 = vld [vmem:[%s444_s12] sm:$0x3]  ;;  %599 = vperm.xlu1 %1231, %v478_v2   ;;  %559 = vperm.xlu0 %1229, %v478_v2   ;;  %s419_s16 = scalar_lea.vmem %s1582_s0, %s1190_s13  ;;  %s466_s22 = scalar_lea.vmem %s1588_s6, %s1349_s29 }
  0x13   : > { %vm586_vm0 = vcmp.eq.s32.totalorder %v477_v3, 2  ;;  %vm545_vm1 = vcmp.eq.s32.totalorder %v477_v3, 0  ;;  %vm606_vm2 = vcmp.eq.s32.totalorder %v477_v3, 3  ;;  %vm566_vm3 = vcmp.eq.s32.totalorder %v477_v3, 1  ;;  %v474_v15 = vld [vmem:[%s419_s16] sm:$0xff]  ;;  %v475_v16 = vld [vmem:[%s419_s16 + $0x8] sm:$0xff]  ;;  %s473_s12 = scalar_lea.vmem %s1589_s7, %s1619_s24 }
  0x14   : > { %v1358_v4 = vsel %vm586_vm0, 1, %v1277_v1  ;;  %v1360_v5 = vsel %vm545_vm1, 1, %v1277_v1  ;;  %v1362_v6 = vsel %vm606_vm2, 1, %v1277_v1  ;;  %v1364_v7 = vsel %vm566_vm3, 1, %v1277_v1  ;;  %v1391_v44 = vld [vmem:[%s453_s19] sm:$0x3] }
  0x15   : > { %vm626_vm4 = vcmp.eq.s32.totalorder %v477_v3, 4  ;;  %vm646_vm5 = vcmp.eq.s32.totalorder %v477_v3, 5  ;;  %vm666_vm6 = vcmp.eq.s32.totalorder %v477_v3, 6  ;;  %v481_v19 = vrot.slane %v474_v15, 4  ;;  %s1191_s29 = sshll.u32 %s1619_s24, 3 }
  0x16   : > { %1232 = vset.pattern.permute.xlu1 %v1278_v8  ;;  %1230 = vset.pattern.permute.xlu0 %v1279_v9  ;;  %v1366_v10 = vsel %vm626_vm4, 1, %v1277_v1  ;;  %v1368_v13 = vsel %vm646_vm5, 1, %v1277_v1  ;;  %v1371_v14 = vsel %vm666_vm6, 1, %v1277_v1  ;;  %v487_v20 = vrot.slane %v475_v16, 4  ;;  %s429_s9 = scalar_lea.vmem %s1583_s1, %s1191_s29 }
  0x17   : > { %619 = vperm.xlu1 %1232, %v478_v2   ;;  %579 = vperm.xlu0 %1230, %v478_v2   ;;  %vm686_vm7 = vcmp.eq.s32.totalorder %v477_v3, 7  ;;  %v482_v22 = vmax.f32 %v474_v15, %v481_v19  ;;  %v522_v47 = vrot.slane %v1391_v44, %v1386_v41  ;;  %v526_v48 = vrot.slane %v1391_v44, %v1389_v42 }
  0x18   : > { %v1376_v21 = vsel %vm686_vm7, 1, %v1277_v1  ;;  %v488_v23 = vmax.f32 %v475_v16, %v487_v20  ;;  %vm706_vm11 = vcmp.ne.s32.totalorder %v1391_v44, 0 }
  0x19   : > { %v483_v24 = vrot.slane %v482_v22, 2  ;;  %vm527_vm8 = vcmp.eq.s32.totalorder %v1379_v37, %v522_v47  ;;  %vm528_vm9 = vcmp.eq.s32.totalorder %v1379_v37, %v526_v48  ;;  %v631_v47 = vrot.slane %v1366_v10, %v1386_v41 }
  0x1a   : > { %v489_v25 = vrot.slane %v488_v23, 2  ;;  %v529_v55 = vsel %vm527_vm8, %v474_v15, 0.0  ;;  %v530_v56 = vsel %vm528_vm9, %v475_v16, 0.0  ;;  %v651_v48 = vrot.slane %v1368_v13, %v1386_v41 }
  0x1b   : > { %1233 = vset.pattern.permute.xlu1 %v1280_v11  ;;  %1234 = vset.pattern.permute.xlu0 %v1281_v12  ;;  %v484_v26 = vmax.f32 %v482_v22, %v483_v24  ;;  %v531_v59 = vrot.slane %v529_v55, 4  ;;  %v537_v60 = vrot.slane %v530_v56, 4  ;;  %vm1482_vm4 = vcmp.eq.s32.totalorder %v631_v47, 1 }
  0x1c   : > { %639 = vperm.xlu1 %1233, %v478_v2   ;;  %659 = vperm.xlu0 %1234, %v478_v2   ;;  %v490_v27 = vmax.f32 %v488_v23, %v489_v25  ;;  %vm1499_vm6 = vcmp.eq.s32.totalorder %v651_v48, 1  ;;  %v778_v48 = vsub.s32 6, %v1379_v37 }
  0x1d   : > { %v485_v28 = vrot.slane %v484_v26, 1  ;;  %v532_v61 = vadd.f32 %v531_v59, %v529_v55  ;;  %v538_v62 = vadd.f32 %v537_v60, %v530_v56 }
  0x1e   : > { %v491_v29 = vrot.slane %v490_v27, 1 }
  0x1f   : > { %v486_v30 = vmax.f32 %v484_v26, %v485_v28  ;;  %v533_v63 = vrot.slane %v532_v61, 2  ;;  %v539_v0 = vrot.slane %v538_v62, 2 }
  0x20   : > { %1235 = vset.pattern.permute.xlu1 %v1282_v17  ;;  %1237 = vset.pattern.permute.xlu0 %v1283_v18  ;;  %v492_v31 = vmax.f32 %v490_v27, %v491_v29 }
  0x21   : > { %679 = vperm.xlu1 %1235, %v478_v2   ;;  %v493_v32 = vsub.f32 %v474_v15, %v486_v30  ;;  %v540_v3 = vadd.f32 %v539_v0, %v538_v62  ;;  %v1493_v62 = vld [vmem:[%s1584_s2] sm:$0xff] }
  0x22   : > { %v494_v33 = vsub.f32 %v475_v16, %v492_v31  ;;  %v1284_v16 = vmov 1966171168  }
  0x23   : > { %v495_v34 = vmul.f32 1.442695, %v493_v32  ;;  %v541_v15 = vrot.slane %v540_v3, 1  ;;  %v729_v17 = vunpack.c.l.s4 %v1284_v16  ;;  %v554_v32 = vrot.slane %v1360_v5, %v1389_v42 }
  0x24   : > { %v497_v35 = vmul.f32 1.442695, %v494_v33  ;;  %v571_v33 = vrot.slane %v1364_v7, %v1386_v41 }
  0x25   : > { %1236 = vset.pattern.permute.xlu1 %v1283_v18  ;;  %1238 = vpow2.f32 %v495_v34  ;;  %v542_v22 = vadd.f32 %v541_v15, %v540_v3  ;;  %v730_v23 = vunpack.c.0.s8 %v729_v17  ;;  %v575_v34 = vrot.slane %v1364_v7, %v1389_v42 }
  0x26   : > { %699 = vperm.xlu1 %1236, %v478_v2   ;;  %1240 = vpow2.f32 %v497_v35  ;;  %v534_v2 = vadd.f32 %v533_v63, %v532_v61  ;;  %vm1438_vm13 = vcmp.eq.s32.totalorder %v554_v32, 1  ;;  %vm1442_vm14 = vcmp.eq.s32.totalorder %v571_v33, 1 }
  0x27   : > { %v1404_v26 = vsub.s32 %v730_v23, %v1379_v37  ;;  %vm1446_vm15 = vcmp.eq.s32.totalorder %v575_v34, 1 }
  0x28   : > { %v535_v12 = vrot.slane %v534_v2, 1 }
  0x2a   : > { %v536_v20 = vadd.f32 %v535_v12, %v534_v2 }
  0x2f   : > { %v1239_v38 = vpop.eup %1238 }
  0x30   : > { %v1241_v39 = vpop.eup %1240  ;;  %v499_v40 = vrot.slane %v1239_v38, 4 }
  0x31   : > { %v505_v43 = vrot.slane %v1241_v39, 4 }
  0x32   : > { %v500_v45 = vadd.f32 %v1239_v38, %v499_v40  ;;  %v595_v40 = vrot.slane %v1358_v4, %v1389_v42 }
  0x33   : > { %v506_v46 = vadd.f32 %v1241_v39, %v505_v43  ;;  %v591_v39 = vrot.slane %v1358_v4, %v1386_v41  ;;  %v611_v43 = vrot.slane %v1362_v6, %v1386_v41 }
  0x34   : > { %v501_v49 = vrot.slane %v500_v45, 2  ;;  %vm1462_vm1 = vcmp.eq.s32.totalorder %v595_v40, 1 }
  0x35   : > { %v507_v50 = vrot.slane %v506_v46, 2  ;;  %vm1458_vm0 = vcmp.eq.s32.totalorder %v591_v39, 1  ;;  %vm1466_vm2 = vcmp.eq.s32.totalorder %v611_v43, 1 }
  0x36   : > { %v502_v51 = vadd.f32 %v501_v49, %v500_v45  ;;  %v655_v49 = vrot.slane %v1368_v13, %v1389_v42 }
  0x37   : > { %v508_v52 = vadd.f32 %v507_v50, %v506_v46  ;;  %v761_v46 = vrot.slane %v1493_v62, %v1386_v41 }
  0x38   : > { %v503_v53 = vrot.slane %v502_v51, 1  ;;  %vm1503_vm7 = vcmp.eq.s32.totalorder %v655_v49, 1  ;;  %v790_v49 = vsub.s32 5, %v1379_v37 }
  0x39   : > { %v509_v54 = vrot.slane %v508_v52, 1 }
  0x3a   : > { %v504_v57 = vadd.f32 %v503_v53, %v502_v51 }
  0x3b   : > { %v510_v58 = vadd.f32 %v509_v54, %v508_v52 }
  0x3c   : > { %1242 = vlog2.f32 %v504_v57 }
  0x3d   : > { %1244 = vlog2.f32 %v510_v58 }
  0x3e   : > { %1246 = vrcp.f32 %v1493_v62 }
  0x46   : > { %v1243_v1 = vpop.eup %1242 }
  0x47   : > { %v1245_v8 = vpop.eup %1244  ;;  %v512_v9 = vmul.f32 0.6931472, %v1243_v1 }
  0x48   : > { %v514_v11 = vmul.f32 0.6931472, %v1245_v8  ;;  %v1247_v40 = vpop.eup %1246 }
  0x49   : > { %v515_v18 = vadd.f32 %v512_v9, %v486_v30  ;;  %v671_v9 = vrot.slane %v1371_v14, %v1386_v41  ;;  %v815_v50 = vrot.slane %v1247_v40, %v1404_v26 }
  0x4a   : > { %v516_v19 = vadd.f32 %v514_v11, %v492_v31  ;;  %v550_v31 = vrot.slane %v1360_v5, %v1386_v41  ;;  %v615_v5 = vrot.slane %v1362_v6, %v1389_v42  ;;  %v635_v6 = vrot.slane %v1366_v10, %v1389_v42 }
  0x4b   : > { %v1399_v24 = vsub.f32 %v515_v18, %v536_v20  ;;  %v675_v11 = vrot.slane %v1371_v14, %v1389_v42  ;;  %vm676_vm8 = vcmp.eq.s32.totalorder %v671_v9, 1 }
  0x4c   : > { %v1401_v25 = vsub.f32 %v516_v19, %v542_v22  ;;  %vm1434_vm12 = vcmp.eq.s32.totalorder %v550_v31, 1  ;;  %vm1470_vm3 = vcmp.eq.s32.totalorder %v615_v5, 1  ;;  %vm1486_vm5 = vcmp.eq.s32.totalorder %v635_v6, 1 }
  0x4d   : > { %vm677_vm9 = vcmp.eq.s32.totalorder %v675_v11, 1  ;;  %v764_v5 = vsub.s32 4, %v1379_v37  ;;  %v770_v6 = vmul.f32 10.0, %v1247_v40 }
  0x4e   : > { %v894_v27 = vcombine.low %v1399_v24, %v1401_v25 }
  0x4f   : > { %v779_v1 = vrot.slane %v770_v6, %v778_v48 }
  0x50   : > { %v901_v28 = vrot.slane %v894_v27, %v1404_v26 }
  0x52   : > { %v908_v29 = vrot.slane %v901_v28, %v1404_v26 }
  0x54   : > { %v910_v30 = vsel %vm706_vm11, 0.0, %v908_v29  ;;  %v691_v29 = vrot.slane %v1376_v21, %v1386_v41 }
  0x55   : > { %915 = vst.msk [vmem:[%s466_s22] sm:$0x3] %vm913_vm10, %v910_v30  ;;  %v695_v30 = vrot.slane %v1376_v21, %v1389_v42  ;;  %v774_v21 = vsub.s32 2, %v1379_v37 }
  0x56   : > { %vm696_vm10 = vcmp.eq.s32.totalorder %v691_v29, 1 }
  0x57   : > { %v775_v61 = vrot.slane %v770_v6, %v774_v21 }
  0x91   : > { %v600_v35 = vpop.permute.xlu1 %599  ;;  %v560_v38 = vpop.permute.xlu0 %559 }
  0x92   : > { %v562_v13 = vsel %vm1434_vm12, %v560_v38, 0.0  ;;  %v563_v55 = vsel %vm1438_vm13, %v560_v38, 0.0  ;;  %v602_v63 = vsel %vm1458_vm0, %v600_v35, 0.0  ;;  %v603_v0 = vsel %vm1462_vm1, %v600_v35, 0.0 }
  0x93   : > { %vm697_vm12 = vcmp.eq.s32.totalorder %v695_v30, 1  ;;  %v480_v30 = vld [vmem:[%s429_s9] sm:$0xff]  ;;  %vm960_vm13 = vcmask 1040384  }
  0x96   : > { %v620_v52 = vpop.permute.xlu1 %619  ;;  %v580_v54 = vpop.permute.xlu0 %579 }
  0x97   : > { %v582_v56 = vsel %vm1442_vm14, %v580_v54, 0.0  ;;  %v583_v57 = vsel %vm1446_vm15, %v580_v54, 0.0  ;;  %v622_v12 = vsel %vm1466_vm2, %v620_v52, 0.0  ;;  %v623_v15 = vsel %vm1470_vm3, %v620_v52, 0.0 }
  0x98   : > { %v584_v58 = vadd.f32 %v582_v56, %v562_v13  ;;  %v585_v59 = vadd.f32 %v583_v57, %v563_v55  ;;  %v765_v54 = vrot.slane %v1493_v62, %v764_v5  ;;  %v787_v13 = vrot.slane %v1493_v62, %v1389_v42 }
  0x99   : > { %v798_v55 = vsub.s32 3, %v1379_v37  ;;  %v802_v56 = vsub.s32 7, %v1379_v37 }
  0x9a   : > { %v604_v3 = vadd.f32 %v602_v63, %v584_v58  ;;  %v605_v8 = vadd.f32 %v603_v0, %v585_v59  ;;  %v791_v63 = vrot.slane %v1493_v62, %v790_v49  ;;  %v829_v0 = vcombine.high %v815_v50, %v815_v50 }
  0x9b   : > { %v640_v16 = vpop.permute.xlu1 %639  ;;  %v660_v17 = vpop.permute.xlu0 %659  ;;  %v799_v9 = vrot.slane %v770_v6, %v798_v55  ;;  %v803_v11 = vrot.slane %v770_v6, %v802_v56  ;;  %v1285_v6 = vmov 286326784  }
  0x9c   : > { %v624_v18 = vadd.f32 %v622_v12, %v604_v3  ;;  %v625_v19 = vadd.f32 %v623_v15, %v605_v8  ;;  %v642_v20 = vsel %vm1482_vm4, %v640_v16, 0.0  ;;  %v643_v22 = vsel %vm1486_vm5, %v640_v16, 0.0 }
  0x9d   : > { %v662_v14 = vsel %vm1499_vm6, %v660_v17, 0.0  ;;  %v663_v23 = vsel %vm1503_vm7, %v660_v17, 0.0  ;;  %v822_v12 = vrot.slane %v815_v50, %v1404_v26  ;;  %v862_v48 = vunpack.c.l.s4 %v1285_v6 }
  0x9e   : > { %v644_v27 = vadd.f32 %v642_v20, %v624_v18  ;;  %v645_v28 = vadd.f32 %v643_v22, %v625_v19  ;;  %v836_v19 = vrot.slane %v829_v0, %v1404_v26 }
  0x9f   : > { %v823_v29 = vcombine.high %v822_v12, %v822_v12  ;;  %v863_v50 = vunpack.c.0.s8 %v862_v48 }
  0xa0   : > { %v664_v31 = vadd.f32 %v662_v14, %v644_v27  ;;  %v665_v32 = vadd.f32 %v663_v23, %v645_v28  ;;  %v680_v33 = vpop.permute.xlu1 %679 }
  0xa1   : > { %v682_v34 = vsel %vm676_vm8, %v680_v33, 0.0  ;;  %v683_v35 = vsel %vm677_vm9, %v680_v33, 0.0 }
  0xa2   : > { %v684_v38 = vadd.f32 %v682_v34, %v664_v31  ;;  %v685_v39 = vadd.f32 %v683_v35, %v665_v32  ;;  %v837_v35 = vcombine.high %v836_v19, %v836_v19 }
  0xa5   : > { %v700_v43 = vpop.permute.xlu1 %699 }
  0xa6   : > { %v702_v45 = vsel %vm696_vm10, %v700_v43, 0.0  ;;  %v703_v7 = vsel %vm697_vm12, %v700_v43, 0.0 }
  0xa7   : > { %v704_v4 = vadd.f32 %v702_v45, %v684_v38  ;;  %v705_v47 = vadd.f32 %v703_v7, %v685_v39 }
  0xa9   : > { %v711_v51 = vrot.slane %v704_v4, 2  ;;  %v712_v52 = vrot.slane %v705_v47, 2  ;;  %v719_v53 = vrot.slane %v704_v4, 6  ;;  %v720_v10 = vrot.slane %v705_v47, 6 }
  0xab   : > { %v715_v57 = vadd.f32 %v711_v51, %v704_v4  ;;  %v716_v58 = vadd.f32 %v712_v52, %v705_v47  ;;  %v723_v59 = vsub.f32 %v704_v4, %v719_v53  ;;  %v724_v60 = vsub.f32 %v705_v47, %v720_v10 }
  0xac   : > { %v866_v53 = vsub.s32 %v863_v50, %v1379_v37 }
  0xad   : > { %v717_v2 = vmul.f32 0.5, %v715_v57  ;;  %v718_v3 = vmul.f32 0.5, %v716_v58  ;;  %v727_v8 = vcombine.low %v723_v59, %v724_v60 }
  0xaf   : > { %v734_v15 = vrot.slane %v727_v8, %v1404_v26  ;;  %v768_v16 = vsub.f32 %v717_v2, %v761_v46  ;;  %v769_v17 = vsub.f32 %v718_v3, %v765_v54  ;;  %v794_v18 = vsub.f32 %v717_v2, %v787_v13 }
  0xb0   : > { %v795_v62 = vsub.f32 %v718_v3, %v791_v63 }
  0xb1   : > { %v741_v20 = vrot.slane %v734_v15, %v1404_v26  ;;  %v745_v22 = vcombine.high %v734_v15, %v734_v15  ;;  %v782_v14 = vmul.f32 %v775_v61, %v768_v16  ;;  %v783_v23 = vmul.f32 %v779_v1, %v769_v17 }
  0xb2   : > { %v806_v27 = vmul.f32 %v799_v9, %v794_v18  ;;  %v807_v28 = vmul.f32 %v803_v11, %v795_v62  ;;  %v1286_v17 = vmov 0.0  }
  0xb3   : > { %v742_v31 = vcombine.high %v741_v20, %v741_v20  ;;  %v752_v32 = vrot.slane %v745_v22, %v1404_v26  ;;  %v845_v33 = vcombine.low %v782_v14, %v783_v23  ;;  %v1184_v18 = vsel %vm706_vm11, 1.0, %v1286_v17 }
  0xb4   : > { %v851_v34 = vcombine.low %v806_v27, %v807_v28 }
  0xb5   : > { %v744_v38 = vsel %vm706_vm11, %v742_v31, 1.0  ;;  %v753_v39 = vcombine.high %v752_v32, %v752_v32  ;;  %v847_v40 = vsub.f32 %v480_v30, %v845_v33 }
  0xb6   : > { %v853_v43 = vsub.f32 %v480_v30, %v851_v34  ;;  %v825_v45 = vmul.f32 %v823_v29, %v744_v38 }
  0xb7   : > { %v755_v7 = vsel %vm706_vm11, %v753_v39, 1.0  ;;  %v848_v4 = vand.u32 2147483647, %v847_v40 }
  0xb8   : > { %v854_v46 = vand.u32 2147483647, %v853_v43  ;;  %1248 = vlog2.f32 %v825_v45  ;;  %v839_v21 = vmul.f32 %v837_v35, %v755_v7 }
  0xba   : > { %v1185_v47 = vrot.slane %v854_v46, 9  ;;  %1250 = vlog2.f32 %v839_v21 }
  0xbc   : > { %v859_v49 = vadd.f32 %v1185_v47, %v848_v4 }
  0xc2   : > { %v1249_v51 = vpop.eup %1248 }
  0xc3   : > { %v827_v52 = vmul.f32 0.6931472, %v1249_v51 }
  0xc4   : > { %v1251_v10 = vpop.eup %1250 }
  0xc5   : > { %v828_v54 = vmul.f32 5.0, %v827_v52  ;;  %v841_v13 = vmul.f32 0.6931472, %v1251_v10 }
  0xc7   : > { %v842_v55 = vmul.f32 5.0, %v841_v13  ;;  %v867_v56 = vrot.slane %v828_v54, %v866_v53 }
  0xc9   : > { %v869_v57 = vsub.f32 %v480_v30, %v867_v56  ;;  %v883_v58 = vrot.slane %v842_v55, %v866_v53 }
  0xcb   : > { %v870_v59 = vand.u32 2147483647, %v869_v57  ;;  %v885_v60 = vsub.f32 %v480_v30, %v883_v58 }
  0xcd   : > { %v1186_v61 = vrot.slane %v870_v59, 10  ;;  %v886_v63 = vand.u32 2147483647, %v885_v60 }
  0xcf   : > { %v875_v0 = vadd.f32 %v1186_v61, %v859_v49  ;;  %v1187_v1 = vrot.slane %v886_v63, 11 }
  0xd1   : > { %v891_v2 = vadd.f32 %v1187_v1, %v875_v0 }
  0xd3   : > { %v916_v3 = vmul.f32 0.25, %v891_v2 }
  0xd5   : > { %v921_v8 = vrot.slane %v916_v3, %v1386_v41  ;;  %v925_v9 = vrot.slane %v916_v3, %v764_v5 }
  0xd7   : > { %v928_v11 = vadd.f32 %v921_v8, %v1399_v24  ;;  %v929_v12 = vadd.f32 %v925_v9, %v1401_v25 }
  0xd9   : > { %v932_v15 = vcombine.low %v928_v11, %v929_v12 }
  0xdb   : > { %v939_v16 = vrot.slane %v932_v15, %v1404_v26 }
  0xdd   : > { %v946_v62 = vrot.slane %v939_v16, %v1404_v26  ;;  %v974_v26 = vand.u32 127, %v517_v36 }
  0xdf   : > { %v948_v19 = vmul.f32 %v1184_v18, %v946_v62  ;;  %vm975_vm11 = vcmp.eq.s32.totalorder %v974_v26, 0 }
  0xe1   : > { %v953_v20 = vrot.slane %v948_v19, %v1386_v41  ;;  %v957_v37 = vrot.slane %v948_v19, %v1389_v42 }
  0xe3   : > { %v961_v5 = vsel %vm960_vm13, %v953_v20, 0.0  ;;  %v962_v24 = vsel %vm960_vm13, %v957_v37, 0.0 }
  0xe4   : > { %v963_v22 = vadd.f32 %v962_v24, %v961_v5 }
  0xe6   : > { %964 = vadd.xlane.f32.xlu0 %v963_v22 }
 0x173   : > { %v965_v25 = vpop.xlane.xlu0 %964 }
 0x174   : > { %v966_v14 = vrot.slane %v965_v25, 4 }
 0x176   : > { %v967_v23 = vadd.f32 %v966_v14, %v965_v25 }
 0x178   : > { %v968_v27 = vrot.slane %v967_v23, 2 }
 0x17a   : > { %v969_v28 = vadd.f32 %v968_v27, %v967_v23 }
 0x17c   : > { %v970_v44 = vrot.slane %v969_v28, 1 }
 0x17e   : > { %v971_v29 = vadd.f32 %v970_v44, %v969_v28 }
 0x180   : > { %1192 = vpush %v971_v29 }
 0x1b1   : > { %s1193_s13 = spop %1192 }
 0x1b2   : > { %v976_v41 = vstv %s1193_s13 }
 0x1b3   : > { %v977_v42 = vsel %vm975_vm11, %v976_v41, 0.0 }
 0x1b4   : > { %978 = vst [vmem:[%s473_s12] sm:$0x1] %v977_v42 }
 0x1b5 PF: > { %s18_s26 = sadd.s32 1, %s1274_s26   ;;  %s1614_s24 = smov %s1270_s25 }
 0x1b6   : > { %p15_p5 = scmp.ge.s32.totalorder %s18_s26, 4   ;;  %s1615_s25 = smov %s1617_s27 }
 0x1b8   :  { %17 = sbr.rel (!%p15_p5) target bundleno = 2 (0x2), region = 101 }

</bundles_post_ra>
